<compile_context>
chip_gen: v6e
topology: v6e:2x2x1
jax: 0.10.0
libtpu: 0.0.40
codegen_flags: <defaults>
</compile_context>

<pallas_src>
import math

import jax
import jax.numpy as jnp
from jax import lax
from jax.experimental import pallas as pl
from jax.experimental.pallas import tpu as pltpu

# ---------------- config (small, consistent with the module) ----------------
B = 2            # batch
C = 4            # num_channels
L = 32           # seq_len
PRED = 8         # pred_len
P = 16           # patch_dim
STRIDE = 8       # stride
NUM_PATCHES = int((L - P) / STRIDE) + 2   # = 4 (matches PatchTST.__init__)
D = 32           # d_model
F = 64           # d_ff
H = 4            # num_heads
HD = D // H      # head dim
NLAYERS = 2      # num_enc_layers
EPS_REVIN = 1e-5
EPS_BN = 1e-5

BC = B * C                    # number of attention sequences
R = BC * NUM_PATCHES          # encoder rows; row = n*BC + bc (n-major)
HR = H * R                    # head-stacked rows


def _vmem():
    return pl.BlockSpec(memory_space=pltpu.MemorySpace.VMEM)


def _batchnorm(h, g, b):
    # BatchNorm1d(d_model) train-mode: stats over all rows per feature.
    # Single-pass variance halves the cross-sublane reductions.
    m = jnp.mean(h, axis=0, keepdims=True)
    v = jnp.mean(h * h, axis=0, keepdims=True) - m * m
    return (h - m) * lax.rsqrt(v + EPS_BN) * g + b


# --------------------------- fused forward kernel ---------------------------
def fused_patchtst_kernel(x_ref, rw_ref, rb_ref, rinv_ref, wfold_ref, posbp_ref,
                          wattn_ref, vec_ref, w1_ref, b1_ref, w2_ref,
                          hmask_ref, amask_ref, wh_ref, bh_ref, y_ref):
    f32 = jnp.float32
    bf16 = jnp.bfloat16

    # ---- RevIN norm: stats over time (last axis), biased variance, f32 ----
    x = x_ref[...]                                            # (BC, L)
    mean = jnp.mean(x, axis=-1, keepdims=True)                # (BC, 1)
    var = jnp.mean(x * x, axis=-1, keepdims=True) - mean * mean
    std = jnp.sqrt(var + EPS_REVIN)
    xn = (x - mean) / std
    xn = xn * rw_ref[...] + rb_ref[...]                       # affine (per channel)

    # ---- replication-pad + unfold + patch-embed fused into ONE matmul ----
    # wfold (L, N*D) is block-structured with the pad row folded into row L-1:
    # zw[bc, n*D+d] == patch_embed(patch n of padded xn[bc])[d]
    zw = jnp.dot(xn.astype(bf16), wfold_ref[...],
                 preferred_element_type=f32)                  # (BC, N*D) lane-dense
    # one tiny relayout to encoder row order (row = n*BC + bc), sublane concat
    z = jnp.concatenate(
        [zw[:, n * D:(n + 1) * D] for n in range(NUM_PATCHES)], axis=0)  # (R, D)
    z = z + posbp_ref[...]                                    # pos + embed bias (precomputed)

    hms = [hmask_ref[h] for h in range(H)]                    # H x (1, D)
    amask = amask_ref[...]                                    # (HR, HR) additive mask

    for l in range(NLAYERS):
        wq = wattn_ref[4 * l + 0]                             # pre-scaled by 1/sqrt(HD)
        wk = wattn_ref[4 * l + 1]
        wv = wattn_ref[4 * l + 2]
        wo = wattn_ref[4 * l + 3]
        vec = vec_ref[l]                                      # (9, D)
        bq, bk, bv = vec[0:1], vec[1:2], vec[2:3]
        bo, b2 = vec[3:4], vec[4:5]
        g1, be1, g2, be2 = vec[5:6], vec[6:7], vec[7:8], vec[8:9]

        zb = z.astype(bf16)
        q = jnp.dot(zb, wq, preferred_element_type=f32) + bq  # (R, D), already scaled
        k = jnp.dot(zb, wk, preferred_element_type=f32) + bk
        v = jnp.dot(zb, wv, preferred_element_type=f32) + bv

        # ---- head-stacked attention: 2 lane-dense matmuls instead of 8 ----
        # Row h*R+i of Q_stk is q_i masked to head-h columns; K is just repeated
        # (cross-head scores are killed by the additive mask); V_stk is masked so
        # head-h output lands only in head-h columns -> summing folds the heads.
        q_stk = jnp.concatenate([q * hms[h] for h in range(H)], axis=0)   # (HR, D)
        k_rep = jnp.concatenate([k] * H, axis=0)                          # (HR, D)
        v_stk = jnp.concatenate([v * hms[h] for h in range(H)], axis=0)   # (HR, D)

        s = lax.dot_general(q_stk.astype(bf16), k_rep.astype(bf16),
                            (((1,), (1,)), ((), ())),
                            preferred_element_type=f32)                   # (HR, HR)
        s = s + amask
        m = jnp.max(s, axis=-1, keepdims=True)
        e = jnp.exp(s - m)
        # TODO(synk): approx reciprocal gives ~1e-3 rel. error on attention probs;
        # switch to exact division if the PyTorch reference tolerance requires it.
        pattn = e * pl.reciprocal(jnp.sum(e, axis=-1, keepdims=True), approx=True)
        o_stk = jnp.dot(pattn.astype(bf16), v_stk.astype(bf16),
                        preferred_element_type=f32)                       # (HR, D)
        o = (o_stk[0 * R:1 * R] + o_stk[1 * R:2 * R]
             + o_stk[2 * R:3 * R] + o_stk[3 * R:4 * R])                   # head concat

        attn = jnp.dot(o.astype(bf16), wo, preferred_element_type=f32) + bo
        z = _batchnorm(z + attn, g1, be1)

        # TODO(synk): PyTorch nn.GELU defaults to exact erf; tanh approximation
        # used here for Mosaic-safe lowering.
        hmid = jax.nn.gelu(
            jnp.dot(z.astype(bf16), w1_ref[l], preferred_element_type=f32) + b1_ref[l],
            approximate=True)
        ff = jnp.dot(hmid.astype(bf16), w2_ref[l], preferred_element_type=f32) + b2
        z = _batchnorm(z + ff, g2, be2)

    # ---- flatten head: Linear(num_patches*d_model -> pred_len), (N,D)-flatten ----
    # zf[bc, n*D + d] = z[n*BC + bc, d]  =>  y = sum_n z_block_n @ Wh_block_n
    y = jnp.dot(z[0:BC, :].astype(bf16), wh_ref[0:D, :], preferred_element_type=f32)
    for n in range(1, NUM_PATCHES):
        y = y + jnp.dot(z[n * BC:(n + 1) * BC, :].astype(bf16),
                        wh_ref[n * D:(n + 1) * D, :],
                        preferred_element_type=f32)
    y = y + bh_ref[...]

    # ---- RevIN denorm (1/(rw + eps^2) precomputed host-side) ----
    y = (y - rb_ref[...]) * rinv_ref[...]
    y_ref[...] = y * std + mean


# ------------------------ host-side operand preparation ----------------------
def _prepare_operands(params):
    f32 = jnp.float32
    bf16 = jnp.bfloat16
    scale = 1.0 / math.sqrt(HD)

    # Fold replication-pad + unfold + patch-embed into one (L, N*D) weight:
    # wbig[n*STRIDE + p, n*D + d] = Wp[p, d]; pad rows (>= L) collapse onto row L-1.
    wbig = jnp.zeros((L + STRIDE, NUM_PATCHES * D), f32)
    for n in range(NUM_PATCHES):
        wbig = wbig.at[n * STRIDE:n * STRIDE + P, n * D:(n + 1) * D].set(params["wp"])
    wfold = wbig[:L].at[L - 1, :].add(jnp.sum(wbig[L:], axis=0))

    # Positional encoding expanded to encoder row order (row = n*BC + bc), + embed bias.
    posbp = jnp.repeat(params["pos"], BC, axis=0) + params["bp"]           # (R, D)

    # Fold 1/sqrt(head_dim) into Wq / bq.
    w_attn = params["w_attn"].at[0::4].multiply(scale)
    vec = params["vec"].at[:, 0, :].multiply(scale)

    # Head masks (H, 1, D) and combined additive attention mask (HR, HR):
    # allowed iff same head block AND same (b, c) sequence.
    d_ids = jnp.arange(D)
    hmask = (d_ids[None, :] // HD == jnp.arange(H)[:, None]).astype(f32).reshape(H, 1, D)
    r_ids = jnp.arange(HR)
    same_head = (r_ids[:, None] // R) == (r_ids[None, :] // R)
    same_seq = (r_ids[:, None] % BC) == (r_ids[None, :] % BC)              # n-major rows
    amask = jnp.where(same_head & same_seq, 0.0, -1e30).astype(f32)

    return dict(
        wfold=wfold.astype(bf16), posbp=posbp,
        w_attn=w_attn.astype(bf16), vec=vec,
        w1=params["w1"].astype(bf16), b1=params["b1"], w2=params["w2"].astype(bf16),
        hmask=hmask, amask=amask,
        wh=params["wh"].astype(bf16), bh=params["bh"],
    )


# ------------------------------- wrapper -------------------------------------
def patchtst_forward(x, params):
    assert x.shape == (B, L, C), x.shape
    ops = _prepare_operands(params)   # constant-folded under jit (params are closure consts)

    # Tiny layout-only prep (1 KiB tensor): (B, L, C) -> (B*C, L), rows bc = b*C + c.
    x2 = jnp.transpose(x, (0, 2, 1)).reshape(BC, L)
    rw = jnp.tile(params["revin_w"], (B,)).reshape(BC, 1)
    rb = jnp.tile(params["revin_b"], (B,)).reshape(BC, 1)
    rinv = 1.0 / (rw + EPS_REVIN * EPS_REVIN)

    # Single fused pallas_call; whole working set (< 200 KiB) is VMEM-resident.
    y2 = pl.pallas_call(
        fused_patchtst_kernel,
        out_shape=jax.ShapeDtypeStruct((BC, PRED), jnp.float32),
        in_specs=[_vmem() for _ in range(15)],
        out_specs=_vmem(),
    )(x2, rw, rb, rinv, ops["wfold"], ops["posbp"],
      ops["w_attn"], ops["vec"], ops["w1"], ops["b1"], ops["w2"],
      ops["hmask"], ops["amask"], ops["wh"], ops["bh"])

    # Final 64-element layout permute back to (B, pred_len, C).
    return jnp.transpose(y2.reshape(B, C, PRED), (0, 2, 1))


# ------------------------- deterministic params ------------------------------
def init_params(key):
    def xavier(k, shape):
        fan_in, fan_out = shape[-2], shape[-1]
        bound = math.sqrt(6.0 / (fan_in + fan_out))
        return jax.random.uniform(k, shape, jnp.float32, -bound, bound)

    keys = jax.random.split(key, 6)
    # packed per-layer vectors: [bq, bk, bv, bo, b2, g1, be1, g2, be2]
    vec = jnp.zeros((NLAYERS, 9, D), jnp.float32)
    vec = vec.at[:, 5, :].set(1.0)   # BN1 gamma
    vec = vec.at[:, 7, :].set(1.0)   # BN2 gamma
    return dict(
        revin_w=jnp.ones((C,), jnp.float32),
        revin_b=jnp.zeros((C,), jnp.float32),
        wp=xavier(keys[0], (P, D)),
        bp=jnp.zeros((1, D), jnp.float32),
        pos=0.02 * jax.random.normal(keys[1], (NUM_PATCHES, D), jnp.float32),
        w_attn=xavier(keys[2], (NLAYERS * 4, D, D)),   # [wq, wk, wv, wo] per layer
        vec=vec,
        w1=xavier(keys[3], (NLAYERS, D, F)),
        b1=jnp.zeros((NLAYERS, 1, F), jnp.float32),
        w2=xavier(keys[4], (NLAYERS, F, D)),
        wh=xavier(keys[5], (NUM_PATCHES * D, PRED)),   # (N,D)-order flatten
        bh=jnp.zeros((1, PRED), jnp.float32),
    )


if __name__ == "__main__":
    x = jax.random.normal(jax.random.PRNGKey(0), (B, L, C), jnp.float32)
    params = init_params(jax.random.PRNGKey(1))
    fwd = jax.jit(lambda xx: patchtst_forward(xx, params))
    out = fwd(x)
    jax.block_until_ready(out)
    assert out.shape == (B, PRED, C), out.shape
    assert bool(jnp.all(jnp.isfinite(out)))
    print("KERNEL_OK")
</pallas_src>

<mosaic_0001>
module attributes {stable_mosaic.version = 11 : i64} {
  func.func @fused_patchtst_kernel(%arg0: memref<8x32xf32, #tpu.memory_space<vmem>>, %arg1: memref<8x1xf32, #tpu.memory_space<vmem>>, %arg2: memref<8x1xf32, #tpu.memory_space<vmem>>, %arg3: memref<8x1xf32, #tpu.memory_space<vmem>>, %arg4: memref<32x128xbf16, #tpu.memory_space<vmem>>, %arg5: memref<32x32xf32, #tpu.memory_space<vmem>>, %arg6: memref<8x32x32xbf16, #tpu.memory_space<vmem>>, %arg7: memref<2x9x32xf32, #tpu.memory_space<vmem>>, %arg8: memref<2x32x64xbf16, #tpu.memory_space<vmem>>, %arg9: memref<2x1x64xf32, #tpu.memory_space<vmem>>, %arg10: memref<2x64x32xbf16, #tpu.memory_space<vmem>>, %arg11: memref<4x1x32xf32, #tpu.memory_space<vmem>>, %arg12: memref<128x128xf32, #tpu.memory_space<vmem>>, %arg13: memref<128x8xbf16, #tpu.memory_space<vmem>>, %arg14: memref<1x8xf32, #tpu.memory_space<vmem>>, %arg15: memref<8x8xf32, #tpu.memory_space<vmem>>) attributes {dimension_semantics = [], scalar_prefetch = 0 : i64, scratch_operands = 0 : i64, tpu.core_type = #tpu.core_type<tc>} {
    %c0 = arith.constant 0 : index
    %c0_0 = arith.constant 0 : index
    %0 = vector.load %arg0[%c0, %c0_0] : memref<8x32xf32, #tpu.memory_space<vmem>>, vector<8x32xf32>
    %cst = arith.constant dense<0.000000e+00> : vector<8xf32>
    %1 = vector.multi_reduction <add>, %0, %cst [1] : vector<8x32xf32> to vector<8xf32>
    %2 = vector.shape_cast %1 : vector<8xf32> to vector<8x1xf32>
    %cst_1 = arith.constant 3.200000e+01 : f32
    %3 = vector.broadcast %cst_1 : f32 to vector<8x1xf32>
    %4 = arith.divf %2, %3 : vector<8x1xf32>
    %5 = arith.mulf %0, %0 : vector<8x32xf32>
    %cst_2 = arith.constant dense<0.000000e+00> : vector<8xf32>
    %6 = vector.multi_reduction <add>, %5, %cst_2 [1] : vector<8x32xf32> to vector<8xf32>
    %7 = vector.shape_cast %6 : vector<8xf32> to vector<8x1xf32>
    %cst_3 = arith.constant 3.200000e+01 : f32
    %8 = vector.broadcast %cst_3 : f32 to vector<8x1xf32>
    %9 = arith.divf %7, %8 : vector<8x1xf32>
    %10 = arith.mulf %4, %4 : vector<8x1xf32>
    %11 = arith.subf %9, %10 : vector<8x1xf32>
    %cst_4 = arith.constant 9.99999974E-6 : f32
    %12 = vector.broadcast %cst_4 : f32 to vector<8x1xf32>
    %13 = arith.addf %11, %12 : vector<8x1xf32>
    %14 = math.sqrt %13 : vector<8x1xf32>
    %15 = vector.broadcast %4 : vector<8x1xf32> to vector<8x32xf32>
    %16 = arith.subf %0, %15 : vector<8x32xf32>
    %17 = vector.broadcast %14 : vector<8x1xf32> to vector<8x32xf32>
    %18 = arith.divf %16, %17 : vector<8x32xf32>
    %c0_5 = arith.constant 0 : index
    %c0_6 = arith.constant 0 : index
    %19 = vector.load %arg1[%c0_5, %c0_6] : memref<8x1xf32, #tpu.memory_space<vmem>>, vector<8x1xf32>
    %20 = vector.broadcast %19 : vector<8x1xf32> to vector<8x32xf32>
    %21 = arith.mulf %18, %20 : vector<8x32xf32>
    %c0_7 = arith.constant 0 : index
    %c0_8 = arith.constant 0 : index
    %22 = vector.load %arg2[%c0_7, %c0_8] : memref<8x1xf32, #tpu.memory_space<vmem>>, vector<8x1xf32>
    %23 = vector.broadcast %22 : vector<8x1xf32> to vector<8x32xf32>
    %24 = arith.addf %21, %23 : vector<8x32xf32>
    %25 = arith.truncf %24 : vector<8x32xf32> to vector<8x32xbf16>
    %c0_9 = arith.constant 0 : index
    %c0_10 = arith.constant 0 : index
    %26 = vector.load %arg4[%c0_9, %c0_10] : memref<32x128xbf16, #tpu.memory_space<vmem>>, vector<32x128xbf16>
    %cst_11 = arith.constant dense<0.000000e+00> : vector<8x128xf32>
    %27 = tpu.matmul %25, %26, %cst_11 {dimension_numbers = #tpu.dot_dimension_numbers<[1], [0], [0], [1], [0, 0, 1, 1], [], []>} : vector<8x32xbf16>, vector<32x128xbf16>, vector<8x128xf32> -> vector<8x128xf32>
    %28 = vector.extract_strided_slice %27 {offsets = [0, 0], sizes = [8, 32], strides = [1, 1]} : vector<8x128xf32> to vector<8x32xf32>
    %29 = vector.extract_strided_slice %27 {offsets = [0, 32], sizes = [8, 32], strides = [1, 1]} : vector<8x128xf32> to vector<8x32xf32>
    %30 = vector.extract_strided_slice %27 {offsets = [0, 64], sizes = [8, 32], strides = [1, 1]} : vector<8x128xf32> to vector<8x32xf32>
    %31 = vector.extract_strided_slice %27 {offsets = [0, 96], sizes = [8, 32], strides = [1, 1]} : vector<8x128xf32> to vector<8x32xf32>
    %32 = tpu.concatenate %28, %29, %30, %31 in 0 : vector<8x32xf32>, vector<8x32xf32>, vector<8x32xf32>, vector<8x32xf32> -> vector<32x32xf32>
    %c0_12 = arith.constant 0 : index
    %c0_13 = arith.constant 0 : index
    %33 = vector.load %arg5[%c0_12, %c0_13] : memref<32x32xf32, #tpu.memory_space<vmem>>, vector<32x32xf32>
    %34 = arith.addf %32, %33 : vector<32x32xf32>
    %c0_14 = arith.constant 0 : index
    %c0_15 = arith.constant 0 : index
    %c0_16 = arith.constant 0 : index
    %35 = vector.load %arg11[%c0_14, %c0_15, %c0_16] : memref<4x1x32xf32, #tpu.memory_space<vmem>>, vector<1x1x32xf32>
    %36 = vector.shape_cast %35 : vector<1x1x32xf32> to vector<1x32xf32>
    %c1 = arith.constant 1 : index
    %c0_17 = arith.constant 0 : index
    %c0_18 = arith.constant 0 : index
    %37 = vector.load %arg11[%c1, %c0_17, %c0_18] : memref<4x1x32xf32, #tpu.memory_space<vmem>>, vector<1x1x32xf32>
    %38 = vector.shape_cast %37 : vector<1x1x32xf32> to vector<1x32xf32>
    %c2 = arith.constant 2 : index
    %c0_19 = arith.constant 0 : index
    %c0_20 = arith.constant 0 : index
    %39 = vector.load %arg11[%c2, %c0_19, %c0_20] : memref<4x1x32xf32, #tpu.memory_space<vmem>>, vector<1x1x32xf32>
    %40 = vector.shape_cast %39 : vector<1x1x32xf32> to vector<1x32xf32>
    %c3 = arith.constant 3 : index
    %c0_21 = arith.constant 0 : index
    %c0_22 = arith.constant 0 : index
    %41 = vector.load %arg11[%c3, %c0_21, %c0_22] : memref<4x1x32xf32, #tpu.memory_space<vmem>>, vector<1x1x32xf32>
    %42 = vector.shape_cast %41 : vector<1x1x32xf32> to vector<1x32xf32>
    %c0_23 = arith.constant 0 : index
    %c0_24 = arith.constant 0 : index
    %43 = vector.load %arg12[%c0_23, %c0_24] : memref<128x128xf32, #tpu.memory_space<vmem>>, vector<128x128xf32>
    %c0_25 = arith.constant 0 : index
    %c0_26 = arith.constant 0 : index
    %c0_27 = arith.constant 0 : index
    %44 = vector.load %arg6[%c0_25, %c0_26, %c0_27] : memref<8x32x32xbf16, #tpu.memory_space<vmem>>, vector<1x32x32xbf16>
    %45 = vector.shape_cast %44 : vector<1x32x32xbf16> to vector<32x32xbf16>
    %c1_28 = arith.constant 1 : index
    %c0_29 = arith.constant 0 : index
    %c0_30 = arith.constant 0 : index
    %46 = vector.load %arg6[%c1_28, %c0_29, %c0_30] : memref<8x32x32xbf16, #tpu.memory_space<vmem>>, vector<1x32x32xbf16>
    %47 = vector.shape_cast %46 : vector<1x32x32xbf16> to vector<32x32xbf16>
    %c2_31 = arith.constant 2 : index
    %c0_32 = arith.constant 0 : index
    %c0_33 = arith.constant 0 : index
    %48 = vector.load %arg6[%c2_31, %c0_32, %c0_33] : memref<8x32x32xbf16, #tpu.memory_space<vmem>>, vector<1x32x32xbf16>
    %49 = vector.shape_cast %48 : vector<1x32x32xbf16> to vector<32x32xbf16>
    %c3_34 = arith.constant 3 : index
    %c0_35 = arith.constant 0 : index
    %c0_36 = arith.constant 0 : index
    %50 = vector.load %arg6[%c3_34, %c0_35, %c0_36] : memref<8x32x32xbf16, #tpu.memory_space<vmem>>, vector<1x32x32xbf16>
    %51 = vector.shape_cast %50 : vector<1x32x32xbf16> to vector<32x32xbf16>
    %c0_37 = arith.constant 0 : index
    %c0_38 = arith.constant 0 : index
    %c0_39 = arith.constant 0 : index
    %52 = vector.load %arg7[%c0_37, %c0_38, %c0_39] : memref<2x9x32xf32, #tpu.memory_space<vmem>>, vector<1x9x32xf32>
    %53 = vector.shape_cast %52 : vector<1x9x32xf32> to vector<9x32xf32>
    %54 = vector.extract_strided_slice %53 {offsets = [0, 0], sizes = [1, 32], strides = [1, 1]} : vector<9x32xf32> to vector<1x32xf32>
    %55 = vector.extract_strided_slice %53 {offsets = [1, 0], sizes = [1, 32], strides = [1, 1]} : vector<9x32xf32> to vector<1x32xf32>
    %56 = vector.extract_strided_slice %53 {offsets = [2, 0], sizes = [1, 32], strides = [1, 1]} : vector<9x32xf32> to vector<1x32xf32>
    %57 = vector.extract_strided_slice %53 {offsets = [3, 0], sizes = [1, 32], strides = [1, 1]} : vector<9x32xf32> to vector<1x32xf32>
    %58 = vector.extract_strided_slice %53 {offsets = [4, 0], sizes = [1, 32], strides = [1, 1]} : vector<9x32xf32> to vector<1x32xf32>
    %59 = vector.extract_strided_slice %53 {offsets = [5, 0], sizes = [1, 32], strides = [1, 1]} : vector<9x32xf32> to vector<1x32xf32>
    %60 = vector.extract_strided_slice %53 {offsets = [6, 0], sizes = [1, 32], strides = [1, 1]} : vector<9x32xf32> to vector<1x32xf32>
    %61 = vector.extract_strided_slice %53 {offsets = [7, 0], sizes = [1, 32], strides = [1, 1]} : vector<9x32xf32> to vector<1x32xf32>
    %62 = vector.extract_strided_slice %53 {offsets = [8, 0], sizes = [1, 32], strides = [1, 1]} : vector<9x32xf32> to vector<1x32xf32>
    %63 = arith.truncf %34 : vector<32x32xf32> to vector<32x32xbf16>
    %cst_40 = arith.constant dense<0.000000e+00> : vector<32x32xf32>
    %64 = tpu.matmul %63, %45, %cst_40 {dimension_numbers = #tpu.dot_dimension_numbers<[1], [0], [0], [1], [0, 0, 1, 1], [], []>} : vector<32x32xbf16>, vector<32x32xbf16>, vector<32x32xf32> -> vector<32x32xf32>
    %65 = vector.broadcast %54 : vector<1x32xf32> to vector<32x32xf32>
    %66 = arith.addf %64, %65 : vector<32x32xf32>
    %cst_41 = arith.constant dense<0.000000e+00> : vector<32x32xf32>
    %67 = tpu.matmul %63, %47, %cst_41 {dimension_numbers = #tpu.dot_dimension_numbers<[1], [0], [0], [1], [0, 0, 1, 1], [], []>} : vector<32x32xbf16>, vector<32x32xbf16>, vector<32x32xf32> -> vector<32x32xf32>
    %68 = vector.broadcast %55 : vector<1x32xf32> to vector<32x32xf32>
    %69 = arith.addf %67, %68 : vector<32x32xf32>
    %cst_42 = arith.constant dense<0.000000e+00> : vector<32x32xf32>
    %70 = tpu.matmul %63, %49, %cst_42 {dimension_numbers = #tpu.dot_dimension_numbers<[1], [0], [0], [1], [0, 0, 1, 1], [], []>} : vector<32x32xbf16>, vector<32x32xbf16>, vector<32x32xf32> -> vector<32x32xf32>
    %71 = vector.broadcast %56 : vector<1x32xf32> to vector<32x32xf32>
    %72 = arith.addf %70, %71 : vector<32x32xf32>
    %73 = vector.broadcast %36 : vector<1x32xf32> to vector<32x32xf32>
    %74 = arith.mulf %66, %73 : vector<32x32xf32>
    %75 = vector.broadcast %38 : vector<1x32xf32> to vector<32x32xf32>
    %76 = arith.mulf %66, %75 : vector<32x32xf32>
    %77 = vector.broadcast %40 : vector<1x32xf32> to vector<32x32xf32>
    %78 = arith.mulf %66, %77 : vector<32x32xf32>
    %79 = vector.broadcast %42 : vector<1x32xf32> to vector<32x32xf32>
    %80 = arith.mulf %66, %79 : vector<32x32xf32>
    %81 = tpu.concatenate %74, %76, %78, %80 in 0 : vector<32x32xf32>, vector<32x32xf32>, vector<32x32xf32>, vector<32x32xf32> -> vector<128x32xf32>
    %82 = tpu.concatenate %69, %69, %69, %69 in 0 : vector<32x32xf32>, vector<32x32xf32>, vector<32x32xf32>, vector<32x32xf32> -> vector<128x32xf32>
    %83 = vector.broadcast %36 : vector<1x32xf32> to vector<32x32xf32>
    %84 = arith.mulf %72, %83 : vector<32x32xf32>
    %85 = vector.broadcast %38 : vector<1x32xf32> to vector<32x32xf32>
    %86 = arith.mulf %72, %85 : vector<32x32xf32>
    %87 = vector.broadcast %40 : vector<1x32xf32> to vector<32x32xf32>
    %88 = arith.mulf %72, %87 : vector<32x32xf32>
    %89 = vector.broadcast %42 : vector<1x32xf32> to vector<32x32xf32>
    %90 = arith.mulf %72, %89 : vector<32x32xf32>
    %91 = tpu.concatenate %84, %86, %88, %90 in 0 : vector<32x32xf32>, vector<32x32xf32>, vector<32x32xf32>, vector<32x32xf32> -> vector<128x32xf32>
    %92 = arith.truncf %81 : vector<128x32xf32> to vector<128x32xbf16>
    %93 = arith.truncf %82 : vector<128x32xf32> to vector<128x32xbf16>
    %cst_43 = arith.constant dense<0.000000e+00> : vector<128x128xf32>
    %94 = tpu.matmul %92, %93, %cst_43 {dimension_numbers = #tpu.dot_dimension_numbers<[1], [1], [0], [0], [0, 0, 1, 0], [], []>} : vector<128x32xbf16>, vector<128x32xbf16>, vector<128x128xf32> -> vector<128x128xf32>
    %95 = arith.addf %94, %43 : vector<128x128xf32>
    %cst_44 = arith.constant dense<0xFF800000> : vector<128xf32>
    %96 = vector.multi_reduction <maximumf>, %95, %cst_44 [1] : vector<128x128xf32> to vector<128xf32>
    %97 = vector.shape_cast %96 : vector<128xf32> to vector<128x1xf32>
    %98 = vector.broadcast %97 : vector<128x1xf32> to vector<128x128xf32>
    %99 = arith.subf %95, %98 : vector<128x128xf32>
    %100 = math.exp %99 : vector<128x128xf32>
    %cst_45 = arith.constant dense<0.000000e+00> : vector<128xf32>
    %101 = vector.multi_reduction <add>, %100, %cst_45 [1] : vector<128x128xf32> to vector<128xf32>
    %102 = vector.shape_cast %101 : vector<128xf32> to vector<128x1xf32>
    %103 = tpu.reciprocal %102 {approx = true} : vector<128x1xf32> -> vector<128x1xf32>
    %104 = vector.broadcast %103 : vector<128x1xf32> to vector<128x128xf32>
    %105 = arith.mulf %100, %104 : vector<128x128xf32>
    %106 = arith.truncf %105 : vector<128x128xf32> to vector<128x128xbf16>
    %107 = arith.truncf %91 : vector<128x32xf32> to vector<128x32xbf16>
    %cst_46 = arith.constant dense<0.000000e+00> : vector<128x32xf32>
    %108 = tpu.matmul %106, %107, %cst_46 {dimension_numbers = #tpu.dot_dimension_numbers<[1], [0], [0], [1], [0, 0, 1, 1], [], []>} : vector<128x128xbf16>, vector<128x32xbf16>, vector<128x32xf32> -> vector<128x32xf32>
    %109 = vector.extract_strided_slice %108 {offsets = [0, 0], sizes = [32, 32], strides = [1, 1]} : vector<128x32xf32> to vector<32x32xf32>
    %110 = vector.extract_strided_slice %108 {offsets = [32, 0], sizes = [32, 32], strides = [1, 1]} : vector<128x32xf32> to vector<32x32xf32>
    %111 = arith.addf %109, %110 : vector<32x32xf32>
    %112 = vector.extract_strided_slice %108 {offsets = [64, 0], sizes = [32, 32], strides = [1, 1]} : vector<128x32xf32> to vector<32x32xf32>
    %113 = arith.addf %111, %112 : vector<32x32xf32>
    %114 = vector.extract_strided_slice %108 {offsets = [96, 0], sizes = [32, 32], strides = [1, 1]} : vector<128x32xf32> to vector<32x32xf32>
    %115 = arith.addf %113, %114 : vector<32x32xf32>
    %116 = arith.truncf %115 : vector<32x32xf32> to vector<32x32xbf16>
    %cst_47 = arith.constant dense<0.000000e+00> : vector<32x32xf32>
    %117 = tpu.matmul %116, %51, %cst_47 {dimension_numbers = #tpu.dot_dimension_numbers<[1], [0], [0], [1], [0, 0, 1, 1], [], []>} : vector<32x32xbf16>, vector<32x32xbf16>, vector<32x32xf32> -> vector<32x32xf32>
    %118 = vector.broadcast %57 : vector<1x32xf32> to vector<32x32xf32>
    %119 = arith.addf %117, %118 : vector<32x32xf32>
    %120 = arith.addf %34, %119 : vector<32x32xf32>
    %cst_48 = arith.constant dense<0.000000e+00> : vector<32xf32>
    %121 = vector.multi_reduction <add>, %120, %cst_48 [0] : vector<32x32xf32> to vector<32xf32>
    %122 = vector.shape_cast %121 : vector<32xf32> to vector<1x32xf32>
    %cst_49 = arith.constant 3.200000e+01 : f32
    %123 = vector.broadcast %cst_49 : f32 to vector<1x32xf32>
    %124 = arith.divf %122, %123 : vector<1x32xf32>
    %125 = arith.mulf %120, %120 : vector<32x32xf32>
    %cst_50 = arith.constant dense<0.000000e+00> : vector<32xf32>
    %126 = vector.multi_reduction <add>, %125, %cst_50 [0] : vector<32x32xf32> to vector<32xf32>
    %127 = vector.shape_cast %126 : vector<32xf32> to vector<1x32xf32>
    %cst_51 = arith.constant 3.200000e+01 : f32
    %128 = vector.broadcast %cst_51 : f32 to vector<1x32xf32>
    %129 = arith.divf %127, %128 : vector<1x32xf32>
    %130 = arith.mulf %124, %124 : vector<1x32xf32>
    %131 = arith.subf %129, %130 : vector<1x32xf32>
    %132 = vector.broadcast %124 : vector<1x32xf32> to vector<32x32xf32>
    %133 = arith.subf %120, %132 : vector<32x32xf32>
    %cst_52 = arith.constant 9.99999974E-6 : f32
    %134 = vector.broadcast %cst_52 : f32 to vector<1x32xf32>
    %135 = arith.addf %131, %134 : vector<1x32xf32>
    %136 = math.rsqrt %135 : vector<1x32xf32>
    %137 = vector.broadcast %136 : vector<1x32xf32> to vector<32x32xf32>
    %138 = arith.mulf %133, %137 : vector<32x32xf32>
    %139 = vector.broadcast %59 : vector<1x32xf32> to vector<32x32xf32>
    %140 = arith.mulf %138, %139 : vector<32x32xf32>
    %141 = vector.broadcast %60 : vector<1x32xf32> to vector<32x32xf32>
    %142 = arith.addf %140, %141 : vector<32x32xf32>
    %143 = arith.truncf %142 : vector<32x32xf32> to vector<32x32xbf16>
    %c0_53 = arith.constant 0 : index
    %c0_54 = arith.constant 0 : index
    %c0_55 = arith.constant 0 : index
    %144 = vector.load %arg8[%c0_53, %c0_54, %c0_55] : memref<2x32x64xbf16, #tpu.memory_space<vmem>>, vector<1x32x64xbf16>
    %145 = vector.shape_cast %144 : vector<1x32x64xbf16> to vector<32x64xbf16>
    %cst_56 = arith.constant dense<0.000000e+00> : vector<32x64xf32>
    %146 = tpu.matmul %143, %145, %cst_56 {dimension_numbers = #tpu.dot_dimension_numbers<[1], [0], [0], [1], [0, 0, 1, 1], [], []>} : vector<32x32xbf16>, vector<32x64xbf16>, vector<32x64xf32> -> vector<32x64xf32>
    %c0_57 = arith.constant 0 : index
    %c0_58 = arith.constant 0 : index
    %c0_59 = arith.constant 0 : index
    %147 = vector.load %arg9[%c0_57, %c0_58, %c0_59] : memref<2x1x64xf32, #tpu.memory_space<vmem>>, vector<1x1x64xf32>
    %148 = vector.shape_cast %147 : vector<1x1x64xf32> to vector<1x64xf32>
    %149 = vector.broadcast %148 : vector<1x64xf32> to vector<32x64xf32>
    %150 = arith.addf %146, %149 : vector<32x64xf32>
    %151 = arith.mulf %150, %150 : vector<32x64xf32>
    %152 = arith.mulf %150, %151 : vector<32x64xf32>
    %cst_60 = arith.constant 4.471500e-02 : f32
    %153 = vector.broadcast %cst_60 : f32 to vector<32x64xf32>
    %154 = arith.mulf %153, %152 : vector<32x64xf32>
    %155 = arith.addf %150, %154 : vector<32x64xf32>
    %cst_61 = arith.constant 0.797884583 : f32
    %156 = vector.broadcast %cst_61 : f32 to vector<32x64xf32>
    %157 = arith.mulf %156, %155 : vector<32x64xf32>
    %158 = math.tanh %157 : vector<32x64xf32>
    %cst_62 = arith.constant 1.000000e+00 : f32
    %159 = vector.broadcast %cst_62 : f32 to vector<32x64xf32>
    %160 = arith.addf %159, %158 : vector<32x64xf32>
    %cst_63 = arith.constant 5.000000e-01 : f32
    %161 = vector.broadcast %cst_63 : f32 to vector<32x64xf32>
    %162 = arith.mulf %161, %160 : vector<32x64xf32>
    %163 = arith.mulf %150, %162 : vector<32x64xf32>
    %164 = arith.truncf %163 : vector<32x64xf32> to vector<32x64xbf16>
    %c0_64 = arith.constant 0 : index
    %c0_65 = arith.constant 0 : index
    %c0_66 = arith.constant 0 : index
    %165 = vector.load %arg10[%c0_64, %c0_65, %c0_66] : memref<2x64x32xbf16, #tpu.memory_space<vmem>>, vector<1x64x32xbf16>
    %166 = vector.shape_cast %165 : vector<1x64x32xbf16> to vector<64x32xbf16>
    %cst_67 = arith.constant dense<0.000000e+00> : vector<32x32xf32>
    %167 = tpu.matmul %164, %166, %cst_67 {dimension_numbers = #tpu.dot_dimension_numbers<[1], [0], [0], [1], [0, 0, 1, 1], [], []>} : vector<32x64xbf16>, vector<64x32xbf16>, vector<32x32xf32> -> vector<32x32xf32>
    %168 = vector.broadcast %58 : vector<1x32xf32> to vector<32x32xf32>
    %169 = arith.addf %167, %168 : vector<32x32xf32>
    %170 = arith.addf %142, %169 : vector<32x32xf32>
    %cst_68 = arith.constant dense<0.000000e+00> : vector<32xf32>
    %171 = vector.multi_reduction <add>, %170, %cst_68 [0] : vector<32x32xf32> to vector<32xf32>
    %172 = vector.shape_cast %171 : vector<32xf32> to vector<1x32xf32>
    %cst_69 = arith.constant 3.200000e+01 : f32
    %173 = vector.broadcast %cst_69 : f32 to vector<1x32xf32>
    %174 = arith.divf %172, %173 : vector<1x32xf32>
    %175 = arith.mulf %170, %170 : vector<32x32xf32>
    %cst_70 = arith.constant dense<0.000000e+00> : vector<32xf32>
    %176 = vector.multi_reduction <add>, %175, %cst_70 [0] : vector<32x32xf32> to vector<32xf32>
    %177 = vector.shape_cast %176 : vector<32xf32> to vector<1x32xf32>
    %cst_71 = arith.constant 3.200000e+01 : f32
    %178 = vector.broadcast %cst_71 : f32 to vector<1x32xf32>
    %179 = arith.divf %177, %178 : vector<1x32xf32>
    %180 = arith.mulf %174, %174 : vector<1x32xf32>
    %181 = arith.subf %179, %180 : vector<1x32xf32>
    %182 = vector.broadcast %174 : vector<1x32xf32> to vector<32x32xf32>
    %183 = arith.subf %170, %182 : vector<32x32xf32>
    %cst_72 = arith.constant 9.99999974E-6 : f32
    %184 = vector.broadcast %cst_72 : f32 to vector<1x32xf32>
    %185 = arith.addf %181, %184 : vector<1x32xf32>
    %186 = math.rsqrt %185 : vector<1x32xf32>
    %187 = vector.broadcast %186 : vector<1x32xf32> to vector<32x32xf32>
    %188 = arith.mulf %183, %187 : vector<32x32xf32>
    %189 = vector.broadcast %61 : vector<1x32xf32> to vector<32x32xf32>
    %190 = arith.mulf %188, %189 : vector<32x32xf32>
    %191 = vector.broadcast %62 : vector<1x32xf32> to vector<32x32xf32>
    %192 = arith.addf %190, %191 : vector<32x32xf32>
    %c4 = arith.constant 4 : index
    %c0_73 = arith.constant 0 : index
    %c0_74 = arith.constant 0 : index
    %193 = vector.load %arg6[%c4, %c0_73, %c0_74] : memref<8x32x32xbf16, #tpu.memory_space<vmem>>, vector<1x32x32xbf16>
    %194 = vector.shape_cast %193 : vector<1x32x32xbf16> to vector<32x32xbf16>
    %c5 = arith.constant 5 : index
    %c0_75 = arith.constant 0 : index
    %c0_76 = arith.constant 0 : index
    %195 = vector.load %arg6[%c5, %c0_75, %c0_76] : memref<8x32x32xbf16, #tpu.memory_space<vmem>>, vector<1x32x32xbf16>
    %196 = vector.shape_cast %195 : vector<1x32x32xbf16> to vector<32x32xbf16>
    %c6 = arith.constant 6 : index
    %c0_77 = arith.constant 0 : index
    %c0_78 = arith.constant 0 : index
    %197 = vector.load %arg6[%c6, %c0_77, %c0_78] : memref<8x32x32xbf16, #tpu.memory_space<vmem>>, vector<1x32x32xbf16>
    %198 = vector.shape_cast %197 : vector<1x32x32xbf16> to vector<32x32xbf16>
    %c7 = arith.constant 7 : index
    %c0_79 = arith.constant 0 : index
    %c0_80 = arith.constant 0 : index
    %199 = vector.load %arg6[%c7, %c0_79, %c0_80] : memref<8x32x32xbf16, #tpu.memory_space<vmem>>, vector<1x32x32xbf16>
    %200 = vector.shape_cast %199 : vector<1x32x32xbf16> to vector<32x32xbf16>
    %c1_81 = arith.constant 1 : index
    %c0_82 = arith.constant 0 : index
    %c0_83 = arith.constant 0 : index
    %201 = vector.load %arg7[%c1_81, %c0_82, %c0_83] : memref<2x9x32xf32, #tpu.memory_space<vmem>>, vector<1x9x32xf32>
    %202 = vector.shape_cast %201 : vector<1x9x32xf32> to vector<9x32xf32>
    %203 = vector.extract_strided_slice %202 {offsets = [0, 0], sizes = [1, 32], strides = [1, 1]} : vector<9x32xf32> to vector<1x32xf32>
    %204 = vector.extract_strided_slice %202 {offsets = [1, 0], sizes = [1, 32], strides = [1, 1]} : vector<9x32xf32> to vector<1x32xf32>
    %205 = vector.extract_strided_slice %202 {offsets = [2, 0], sizes = [1, 32], strides = [1, 1]} : vector<9x32xf32> to vector<1x32xf32>
    %206 = vector.extract_strided_slice %202 {offsets = [3, 0], sizes = [1, 32], strides = [1, 1]} : vector<9x32xf32> to vector<1x32xf32>
    %207 = vector.extract_strided_slice %202 {offsets = [4, 0], sizes = [1, 32], strides = [1, 1]} : vector<9x32xf32> to vector<1x32xf32>
    %208 = vector.extract_strided_slice %202 {offsets = [5, 0], sizes = [1, 32], strides = [1, 1]} : vector<9x32xf32> to vector<1x32xf32>
    %209 = vector.extract_strided_slice %202 {offsets = [6, 0], sizes = [1, 32], strides = [1, 1]} : vector<9x32xf32> to vector<1x32xf32>
    %210 = vector.extract_strided_slice %202 {offsets = [7, 0], sizes = [1, 32], strides = [1, 1]} : vector<9x32xf32> to vector<1x32xf32>
    %211 = vector.extract_strided_slice %202 {offsets = [8, 0], sizes = [1, 32], strides = [1, 1]} : vector<9x32xf32> to vector<1x32xf32>
    %212 = arith.truncf %192 : vector<32x32xf32> to vector<32x32xbf16>
    %cst_84 = arith.constant dense<0.000000e+00> : vector<32x32xf32>
    %213 = tpu.matmul %212, %194, %cst_84 {dimension_numbers = #tpu.dot_dimension_numbers<[1], [0], [0], [1], [0, 0, 1, 1], [], []>} : vector<32x32xbf16>, vector<32x32xbf16>, vector<32x32xf32> -> vector<32x32xf32>
    %214 = vector.broadcast %203 : vector<1x32xf32> to vector<32x32xf32>
    %215 = arith.addf %213, %214 : vector<32x32xf32>
    %cst_85 = arith.constant dense<0.000000e+00> : vector<32x32xf32>
    %216 = tpu.matmul %212, %196, %cst_85 {dimension_numbers = #tpu.dot_dimension_numbers<[1], [0], [0], [1], [0, 0, 1, 1], [], []>} : vector<32x32xbf16>, vector<32x32xbf16>, vector<32x32xf32> -> vector<32x32xf32>
    %217 = vector.broadcast %204 : vector<1x32xf32> to vector<32x32xf32>
    %218 = arith.addf %216, %217 : vector<32x32xf32>
    %cst_86 = arith.constant dense<0.000000e+00> : vector<32x32xf32>
    %219 = tpu.matmul %212, %198, %cst_86 {dimension_numbers = #tpu.dot_dimension_numbers<[1], [0], [0], [1], [0, 0, 1, 1], [], []>} : vector<32x32xbf16>, vector<32x32xbf16>, vector<32x32xf32> -> vector<32x32xf32>
    %220 = vector.broadcast %205 : vector<1x32xf32> to vector<32x32xf32>
    %221 = arith.addf %219, %220 : vector<32x32xf32>
    %222 = vector.broadcast %36 : vector<1x32xf32> to vector<32x32xf32>
    %223 = arith.mulf %215, %222 : vector<32x32xf32>
    %224 = vector.broadcast %38 : vector<1x32xf32> to vector<32x32xf32>
    %225 = arith.mulf %215, %224 : vector<32x32xf32>
    %226 = vector.broadcast %40 : vector<1x32xf32> to vector<32x32xf32>
    %227 = arith.mulf %215, %226 : vector<32x32xf32>
    %228 = vector.broadcast %42 : vector<1x32xf32> to vector<32x32xf32>
    %229 = arith.mulf %215, %228 : vector<32x32xf32>
    %230 = tpu.concatenate %223, %225, %227, %229 in 0 : vector<32x32xf32>, vector<32x32xf32>, vector<32x32xf32>, vector<32x32xf32> -> vector<128x32xf32>
    %231 = tpu.concatenate %218, %218, %218, %218 in 0 : vector<32x32xf32>, vector<32x32xf32>, vector<32x32xf32>, vector<32x32xf32> -> vector<128x32xf32>
    %232 = vector.broadcast %36 : vector<1x32xf32> to vector<32x32xf32>
    %233 = arith.mulf %221, %232 : vector<32x32xf32>
    %234 = vector.broadcast %38 : vector<1x32xf32> to vector<32x32xf32>
    %235 = arith.mulf %221, %234 : vector<32x32xf32>
    %236 = vector.broadcast %40 : vector<1x32xf32> to vector<32x32xf32>
    %237 = arith.mulf %221, %236 : vector<32x32xf32>
    %238 = vector.broadcast %42 : vector<1x32xf32> to vector<32x32xf32>
    %239 = arith.mulf %221, %238 : vector<32x32xf32>
    %240 = tpu.concatenate %233, %235, %237, %239 in 0 : vector<32x32xf32>, vector<32x32xf32>, vector<32x32xf32>, vector<32x32xf32> -> vector<128x32xf32>
    %241 = arith.truncf %230 : vector<128x32xf32> to vector<128x32xbf16>
    %242 = arith.truncf %231 : vector<128x32xf32> to vector<128x32xbf16>
    %cst_87 = arith.constant dense<0.000000e+00> : vector<128x128xf32>
    %243 = tpu.matmul %241, %242, %cst_87 {dimension_numbers = #tpu.dot_dimension_numbers<[1], [1], [0], [0], [0, 0, 1, 0], [], []>} : vector<128x32xbf16>, vector<128x32xbf16>, vector<128x128xf32> -> vector<128x128xf32>
    %244 = arith.addf %243, %43 : vector<128x128xf32>
    %cst_88 = arith.constant dense<0xFF800000> : vector<128xf32>
    %245 = vector.multi_reduction <maximumf>, %244, %cst_88 [1] : vector<128x128xf32> to vector<128xf32>
    %246 = vector.shape_cast %245 : vector<128xf32> to vector<128x1xf32>
    %247 = vector.broadcast %246 : vector<128x1xf32> to vector<128x128xf32>
    %248 = arith.subf %244, %247 : vector<128x128xf32>
    %249 = math.exp %248 : vector<128x128xf32>
    %cst_89 = arith.constant dense<0.000000e+00> : vector<128xf32>
    %250 = vector.multi_reduction <add>, %249, %cst_89 [1] : vector<128x128xf32> to vector<128xf32>
    %251 = vector.shape_cast %250 : vector<128xf32> to vector<128x1xf32>
    %252 = tpu.reciprocal %251 {approx = true} : vector<128x1xf32> -> vector<128x1xf32>
    %253 = vector.broadcast %252 : vector<128x1xf32> to vector<128x128xf32>
    %254 = arith.mulf %249, %253 : vector<128x128xf32>
    %255 = arith.truncf %254 : vector<128x128xf32> to vector<128x128xbf16>
    %256 = arith.truncf %240 : vector<128x32xf32> to vector<128x32xbf16>
    %cst_90 = arith.constant dense<0.000000e+00> : vector<128x32xf32>
    %257 = tpu.matmul %255, %256, %cst_90 {dimension_numbers = #tpu.dot_dimension_numbers<[1], [0], [0], [1], [0, 0, 1, 1], [], []>} : vector<128x128xbf16>, vector<128x32xbf16>, vector<128x32xf32> -> vector<128x32xf32>
    %258 = vector.extract_strided_slice %257 {offsets = [0, 0], sizes = [32, 32], strides = [1, 1]} : vector<128x32xf32> to vector<32x32xf32>
    %259 = vector.extract_strided_slice %257 {offsets = [32, 0], sizes = [32, 32], strides = [1, 1]} : vector<128x32xf32> to vector<32x32xf32>
    %260 = arith.addf %258, %259 : vector<32x32xf32>
    %261 = vector.extract_strided_slice %257 {offsets = [64, 0], sizes = [32, 32], strides = [1, 1]} : vector<128x32xf32> to vector<32x32xf32>
    %262 = arith.addf %260, %261 : vector<32x32xf32>
    %263 = vector.extract_strided_slice %257 {offsets = [96, 0], sizes = [32, 32], strides = [1, 1]} : vector<128x32xf32> to vector<32x32xf32>
    %264 = arith.addf %262, %263 : vector<32x32xf32>
    %265 = arith.truncf %264 : vector<32x32xf32> to vector<32x32xbf16>
    %cst_91 = arith.constant dense<0.000000e+00> : vector<32x32xf32>
    %266 = tpu.matmul %265, %200, %cst_91 {dimension_numbers = #tpu.dot_dimension_numbers<[1], [0], [0], [1], [0, 0, 1, 1], [], []>} : vector<32x32xbf16>, vector<32x32xbf16>, vector<32x32xf32> -> vector<32x32xf32>
    %267 = vector.broadcast %206 : vector<1x32xf32> to vector<32x32xf32>
    %268 = arith.addf %266, %267 : vector<32x32xf32>
    %269 = arith.addf %192, %268 : vector<32x32xf32>
    %cst_92 = arith.constant dense<0.000000e+00> : vector<32xf32>
    %270 = vector.multi_reduction <add>, %269, %cst_92 [0] : vector<32x32xf32> to vector<32xf32>
    %271 = vector.shape_cast %270 : vector<32xf32> to vector<1x32xf32>
    %cst_93 = arith.constant 3.200000e+01 : f32
    %272 = vector.broadcast %cst_93 : f32 to vector<1x32xf32>
    %273 = arith.divf %271, %272 : vector<1x32xf32>
    %274 = arith.mulf %269, %269 : vector<32x32xf32>
    %cst_94 = arith.constant dense<0.000000e+00> : vector<32xf32>
    %275 = vector.multi_reduction <add>, %274, %cst_94 [0] : vector<32x32xf32> to vector<32xf32>
    %276 = vector.shape_cast %275 : vector<32xf32> to vector<1x32xf32>
    %cst_95 = arith.constant 3.200000e+01 : f32
    %277 = vector.broadcast %cst_95 : f32 to vector<1x32xf32>
    %278 = arith.divf %276, %277 : vector<1x32xf32>
    %279 = arith.mulf %273, %273 : vector<1x32xf32>
    %280 = arith.subf %278, %279 : vector<1x32xf32>
    %281 = vector.broadcast %273 : vector<1x32xf32> to vector<32x32xf32>
    %282 = arith.subf %269, %281 : vector<32x32xf32>
    %cst_96 = arith.constant 9.99999974E-6 : f32
    %283 = vector.broadcast %cst_96 : f32 to vector<1x32xf32>
    %284 = arith.addf %280, %283 : vector<1x32xf32>
    %285 = math.rsqrt %284 : vector<1x32xf32>
    %286 = vector.broadcast %285 : vector<1x32xf32> to vector<32x32xf32>
    %287 = arith.mulf %282, %286 : vector<32x32xf32>
    %288 = vector.broadcast %208 : vector<1x32xf32> to vector<32x32xf32>
    %289 = arith.mulf %287, %288 : vector<32x32xf32>
    %290 = vector.broadcast %209 : vector<1x32xf32> to vector<32x32xf32>
    %291 = arith.addf %289, %290 : vector<32x32xf32>
    %292 = arith.truncf %291 : vector<32x32xf32> to vector<32x32xbf16>
    %c1_97 = arith.constant 1 : index
    %c0_98 = arith.constant 0 : index
    %c0_99 = arith.constant 0 : index
    %293 = vector.load %arg8[%c1_97, %c0_98, %c0_99] : memref<2x32x64xbf16, #tpu.memory_space<vmem>>, vector<1x32x64xbf16>
    %294 = vector.shape_cast %293 : vector<1x32x64xbf16> to vector<32x64xbf16>
    %cst_100 = arith.constant dense<0.000000e+00> : vector<32x64xf32>
    %295 = tpu.matmul %292, %294, %cst_100 {dimension_numbers = #tpu.dot_dimension_numbers<[1], [0], [0], [1], [0, 0, 1, 1], [], []>} : vector<32x32xbf16>, vector<32x64xbf16>, vector<32x64xf32> -> vector<32x64xf32>
    %c1_101 = arith.constant 1 : index
    %c0_102 = arith.constant 0 : index
    %c0_103 = arith.constant 0 : index
    %296 = vector.load %arg9[%c1_101, %c0_102, %c0_103] : memref<2x1x64xf32, #tpu.memory_space<vmem>>, vector<1x1x64xf32>
    %297 = vector.shape_cast %296 : vector<1x1x64xf32> to vector<1x64xf32>
    %298 = vector.broadcast %297 : vector<1x64xf32> to vector<32x64xf32>
    %299 = arith.addf %295, %298 : vector<32x64xf32>
    %300 = arith.mulf %299, %299 : vector<32x64xf32>
    %301 = arith.mulf %299, %300 : vector<32x64xf32>
    %cst_104 = arith.constant 4.471500e-02 : f32
    %302 = vector.broadcast %cst_104 : f32 to vector<32x64xf32>
    %303 = arith.mulf %302, %301 : vector<32x64xf32>
    %304 = arith.addf %299, %303 : vector<32x64xf32>
    %cst_105 = arith.constant 0.797884583 : f32
    %305 = vector.broadcast %cst_105 : f32 to vector<32x64xf32>
    %306 = arith.mulf %305, %304 : vector<32x64xf32>
    %307 = math.tanh %306 : vector<32x64xf32>
    %cst_106 = arith.constant 1.000000e+00 : f32
    %308 = vector.broadcast %cst_106 : f32 to vector<32x64xf32>
    %309 = arith.addf %308, %307 : vector<32x64xf32>
    %cst_107 = arith.constant 5.000000e-01 : f32
    %310 = vector.broadcast %cst_107 : f32 to vector<32x64xf32>
    %311 = arith.mulf %310, %309 : vector<32x64xf32>
    %312 = arith.mulf %299, %311 : vector<32x64xf32>
    %313 = arith.truncf %312 : vector<32x64xf32> to vector<32x64xbf16>
    %c1_108 = arith.constant 1 : index
    %c0_109 = arith.constant 0 : index
    %c0_110 = arith.constant 0 : index
    %314 = vector.load %arg10[%c1_108, %c0_109, %c0_110] : memref<2x64x32xbf16, #tpu.memory_space<vmem>>, vector<1x64x32xbf16>
    %315 = vector.shape_cast %314 : vector<1x64x32xbf16> to vector<64x32xbf16>
    %cst_111 = arith.constant dense<0.000000e+00> : vector<32x32xf32>
    %316 = tpu.matmul %313, %315, %cst_111 {dimension_numbers = #tpu.dot_dimension_numbers<[1], [0], [0], [1], [0, 0, 1, 1], [], []>} : vector<32x64xbf16>, vector<64x32xbf16>, vector<32x32xf32> -> vector<32x32xf32>
    %317 = vector.broadcast %207 : vector<1x32xf32> to vector<32x32xf32>
    %318 = arith.addf %316, %317 : vector<32x32xf32>
    %319 = arith.addf %291, %318 : vector<32x32xf32>
    %cst_112 = arith.constant dense<0.000000e+00> : vector<32xf32>
    %320 = vector.multi_reduction <add>, %319, %cst_112 [0] : vector<32x32xf32> to vector<32xf32>
    %321 = vector.shape_cast %320 : vector<32xf32> to vector<1x32xf32>
    %cst_113 = arith.constant 3.200000e+01 : f32
    %322 = vector.broadcast %cst_113 : f32 to vector<1x32xf32>
    %323 = arith.divf %321, %322 : vector<1x32xf32>
    %324 = arith.mulf %319, %319 : vector<32x32xf32>
    %cst_114 = arith.constant dense<0.000000e+00> : vector<32xf32>
    %325 = vector.multi_reduction <add>, %324, %cst_114 [0] : vector<32x32xf32> to vector<32xf32>
    %326 = vector.shape_cast %325 : vector<32xf32> to vector<1x32xf32>
    %cst_115 = arith.constant 3.200000e+01 : f32
    %327 = vector.broadcast %cst_115 : f32 to vector<1x32xf32>
    %328 = arith.divf %326, %327 : vector<1x32xf32>
    %329 = arith.mulf %323, %323 : vector<1x32xf32>
    %330 = arith.subf %328, %329 : vector<1x32xf32>
    %331 = vector.broadcast %323 : vector<1x32xf32> to vector<32x32xf32>
    %332 = arith.subf %319, %331 : vector<32x32xf32>
    %cst_116 = arith.constant 9.99999974E-6 : f32
    %333 = vector.broadcast %cst_116 : f32 to vector<1x32xf32>
    %334 = arith.addf %330, %333 : vector<1x32xf32>
    %335 = math.rsqrt %334 : vector<1x32xf32>
    %336 = vector.broadcast %335 : vector<1x32xf32> to vector<32x32xf32>
    %337 = arith.mulf %332, %336 : vector<32x32xf32>
    %338 = vector.broadcast %210 : vector<1x32xf32> to vector<32x32xf32>
    %339 = arith.mulf %337, %338 : vector<32x32xf32>
    %340 = vector.broadcast %211 : vector<1x32xf32> to vector<32x32xf32>
    %341 = arith.addf %339, %340 : vector<32x32xf32>
    %342 = vector.extract_strided_slice %341 {offsets = [0, 0], sizes = [8, 32], strides = [1, 1]} : vector<32x32xf32> to vector<8x32xf32>
    %343 = arith.truncf %342 : vector<8x32xf32> to vector<8x32xbf16>
    %c0_117 = arith.constant 0 : index
    %c0_118 = arith.constant 0 : index
    %344 = vector.load %arg13[%c0_117, %c0_118] : memref<128x8xbf16, #tpu.memory_space<vmem>>, vector<32x8xbf16>
    %cst_119 = arith.constant dense<0.000000e+00> : vector<8x8xf32>
    %345 = tpu.matmul %343, %344, %cst_119 {dimension_numbers = #tpu.dot_dimension_numbers<[1], [0], [0], [1], [0, 0, 1, 1], [], []>} : vector<8x32xbf16>, vector<32x8xbf16>, vector<8x8xf32> -> vector<8x8xf32>
    %346 = vector.extract_strided_slice %341 {offsets = [8, 0], sizes = [8, 32], strides = [1, 1]} : vector<32x32xf32> to vector<8x32xf32>
    %347 = arith.truncf %346 : vector<8x32xf32> to vector<8x32xbf16>
    %c32 = arith.constant 32 : index
    %c0_120 = arith.constant 0 : index
    %348 = vector.load %arg13[%c32, %c0_120] : memref<128x8xbf16, #tpu.memory_space<vmem>>, vector<32x8xbf16>
    %cst_121 = arith.constant dense<0.000000e+00> : vector<8x8xf32>
    %349 = tpu.matmul %347, %348, %cst_121 {dimension_numbers = #tpu.dot_dimension_numbers<[1], [0], [0], [1], [0, 0, 1, 1], [], []>} : vector<8x32xbf16>, vector<32x8xbf16>, vector<8x8xf32> -> vector<8x8xf32>
    %350 = arith.addf %345, %349 : vector<8x8xf32>
    %351 = vector.extract_strided_slice %341 {offsets = [16, 0], sizes = [8, 32], strides = [1, 1]} : vector<32x32xf32> to vector<8x32xf32>
    %352 = arith.truncf %351 : vector<8x32xf32> to vector<8x32xbf16>
    %c64 = arith.constant 64 : index
    %c0_122 = arith.constant 0 : index
    %353 = vector.load %arg13[%c64, %c0_122] : memref<128x8xbf16, #tpu.memory_space<vmem>>, vector<32x8xbf16>
    %cst_123 = arith.constant dense<0.000000e+00> : vector<8x8xf32>
    %354 = tpu.matmul %352, %353, %cst_123 {dimension_numbers = #tpu.dot_dimension_numbers<[1], [0], [0], [1], [0, 0, 1, 1], [], []>} : vector<8x32xbf16>, vector<32x8xbf16>, vector<8x8xf32> -> vector<8x8xf32>
    %355 = arith.addf %350, %354 : vector<8x8xf32>
    %356 = vector.extract_strided_slice %341 {offsets = [24, 0], sizes = [8, 32], strides = [1, 1]} : vector<32x32xf32> to vector<8x32xf32>
    %357 = arith.truncf %356 : vector<8x32xf32> to vector<8x32xbf16>
    %c96 = arith.constant 96 : index
    %c0_124 = arith.constant 0 : index
    %358 = vector.load %arg13[%c96, %c0_124] : memref<128x8xbf16, #tpu.memory_space<vmem>>, vector<32x8xbf16>
    %cst_125 = arith.constant dense<0.000000e+00> : vector<8x8xf32>
    %359 = tpu.matmul %357, %358, %cst_125 {dimension_numbers = #tpu.dot_dimension_numbers<[1], [0], [0], [1], [0, 0, 1, 1], [], []>} : vector<8x32xbf16>, vector<32x8xbf16>, vector<8x8xf32> -> vector<8x8xf32>
    %360 = arith.addf %355, %359 : vector<8x8xf32>
    %c0_126 = arith.constant 0 : index
    %c0_127 = arith.constant 0 : index
    %361 = vector.load %arg14[%c0_126, %c0_127] : memref<1x8xf32, #tpu.memory_space<vmem>>, vector<1x8xf32>
    %362 = vector.broadcast %361 : vector<1x8xf32> to vector<8x8xf32>
    %363 = arith.addf %360, %362 : vector<8x8xf32>
    %c0_128 = arith.constant 0 : index
    %c0_129 = arith.constant 0 : index
    %364 = vector.load %arg2[%c0_128, %c0_129] : memref<8x1xf32, #tpu.memory_space<vmem>>, vector<8x1xf32>
    %365 = vector.broadcast %364 : vector<8x1xf32> to vector<8x8xf32>
    %366 = arith.subf %363, %365 : vector<8x8xf32>
    %c0_130 = arith.constant 0 : index
    %c0_131 = arith.constant 0 : index
    %367 = vector.load %arg3[%c0_130, %c0_131] : memref<8x1xf32, #tpu.memory_space<vmem>>, vector<8x1xf32>
    %368 = vector.broadcast %367 : vector<8x1xf32> to vector<8x8xf32>
    %369 = arith.mulf %366, %368 : vector<8x8xf32>
    %370 = vector.broadcast %14 : vector<8x1xf32> to vector<8x8xf32>
    %371 = arith.mulf %369, %370 : vector<8x8xf32>
    %372 = vector.broadcast %4 : vector<8x1xf32> to vector<8x8xf32>
    %373 = arith.addf %371, %372 : vector<8x8xf32>
    %c0_132 = arith.constant 0 : index
    %c0_133 = arith.constant 0 : index
    %374 = vector.load %arg15[%c0_132, %c0_133] : memref<8x8xf32, #tpu.memory_space<vmem>>, vector<8x8xf32>
    tpu.vector_store %arg15[%c0_132, %c0_133], %373 {strides = array<i32>} : memref<8x8xf32, #tpu.memory_space<vmem>>, vector<8x8xf32>,
    return
  }
}

</mosaic_0001>

<bundles_post_ra>
// kernel: _lambda_.1
= control target key start
LH: loop header
LB: loop body
LE: loop exit
PB: predicated region body
PF: predicated region fallthrough
CT: control target
= control target key end

     0   :  { %vm53_vm0 = vcmask 261120   ;;  %v3446_v4 = vmov 0   ;;  %s4528_s0 = inlined_call_operand.vmem [shape: f32[8,32], index: 0, kind: input, shape index: {}]   ;;  %s4529_s1 = inlined_call_operand.vmem [shape: f32[8,1], index: 1, kind: input, shape index: {}, may-alias: {1,3}]   ;;  %s4530_s2 = inlined_call_operand.vmem [shape: f32[8,1], index: 2, kind: input, shape index: {}]   ;;  %s4531_s3 = inlined_call_operand.vmem [shape: f32[8,1], index: 3, kind: input, shape index: {}, may-alias: {1,3}]   ;;  %s4532_s4 = inlined_call_operand.vmem [shape: bf16[32,128], index: 4, kind: input, shape index: {}]   ;;  %s4533_s5 = inlined_call_operand.vmem [shape: f32[32,32], index: 5, kind: input, shape index: {}]   ;;  %s4534_s6 = inlined_call_operand.vmem [shape: bf16[8,32,32], index: 6, kind: input, shape index: {}]   ;;  %s4535_s7 = inlined_call_operand.vmem [shape: f32[2,9,32], index: 7, kind: input, shape index: {}]   ;;  %s4536_s8 = inlined_call_operand.vmem [shape: bf16[2,32,64], index: 8, kind: input, shape index: {}]   ;;  %s4537_s9 = inlined_call_operand.vmem [shape: f32[2,1,64], index: 9, kind: input, shape index: {}]   ;;  %s4538_s10 = inlined_call_operand.vmem [shape: bf16[2,64,32], index: 10, kind: input, shape index: {}]   ;;  %s4539_s11 = inlined_call_operand.vmem [shape: f32[4,1,32], index: 11, kind: input, shape index: {}]   ;;  %s4540_s12 = inlined_call_operand.vmem [shape: f32[128,128], index: 12, kind: input, shape index: {}]   ;;  %s4541_s13 = inlined_call_operand.vmem [shape: bf16[128,8], index: 13, kind: input, shape index: {}]   ;;  %s4542_s14 = inlined_call_operand.vmem [shape: f32[1,8], index: 14, kind: input, shape index: {}]   ;;  %s4543_s15 = inlined_call_operand.hbm [shape: f32[8,8], index: 15, kind: output, shape index: {}]  }
   0x1   :  { %v52_v0 = vld [vmem:[%s4528_s0] sm:$0xff]  ;;  %3206 = vset.pattern.permute.xlu1 %v3446_v4  ;;  %3207 = vset.pattern.permute.xlu0 %v3446_v4 }
   0x2   :  { %v77_v1 = vld [vmem:[%s4529_s1] sm:$0xff]  ;;  %v54_v2 = vsel %vm53_vm0, %v52_v0, 0.0  ;;  %v59_v3 = vmul.f32 %v52_v0, %v52_v0 }
   0x3   :  { %55 = vadd.xlane.f32.xlu0 %v54_v2  ;;  %80 = vperm.xlu1 %3206, %v77_v1   ;;  %v84_v6 = vld [vmem:[%s4530_s2] sm:$0xff] }
   0x4   :  { %v60_v5 = vsel %vm53_vm0, %v59_v3, 0.0 }
   0x7   :  { %61 = vadd.xlane.f32.xlu0 %v60_v5  ;;  %87 = vperm.xlu1 %3206, %v84_v6  }
   0x8   :  { %20 = vsyncpa [#allocation3], 0  ;;  %v3208_v7 = vld [vmem:[%s4532_s4 + $0x8] sm:$0xff]   ;;  %v3447_v8 = vmov 0.0   ;;  %v3209_v9 = vld [vmem:[%s4532_s4] sm:$0xff]   ;;  %vm3448_vm1 = vmmov 0   ;;  %v215_v53 = vlaneseq }
   0x9   :  { %2911 = vmatprep.subr.bf16.mxu0 %v3447_v8  ;;  %2915 = vmatprep.mubr.msk.bf16.mxu0 %vm3448_vm1, %v3447_v8  ;;  %v3210_v30 = vld [vmem:[%s4534_s6 + $0x18] sm:$0xff]   ;;  %v3211_v31 = vld [vmem:[%s4534_s6 + $0x8] sm:$0xff]   ;;  %v3212_v32 = vld [vmem:[%s4534_s6 + $0x10] sm:$0xff]   ;;  %s3449_s19 = smov 64   ;;  %s3450_s20 = smov 96   ;;  %vm1169_vm4 = vcmask 523264  }
   0xa   :  { %2912 = vmatpush3.bf16.msra.mxu0 %v3208_v7  ;;  %2919 = vmatprep.subr.bf16.mxu1 %v3211_v31  ;;  %v3213_v33 = vld [vmem:[%s4534_s6] sm:$0xff]   ;;  %v3214_v34 = vld [vmem:[%s4534_s6 + $0x28] sm:$0xff]   ;;  %s3451_s21 = smov 32   ;;  %v163_v45 = vld [vmem:[%s4533_s5 + $0x10] sm:$0xff]  ;;  %v3614_v54 = vshrl.u32 %v215_v53, 7  ;;  %s3452_s17 = smov [#allocation2]  }
   0xb   :  { %2913 = vmatprep.subr.bf16.mxu0 %v3447_v8  ;;  %2920 = vmatpush3.bf16.msra.mxu1 %v3211_v31  ;;  %v161_v39 = vld [vmem:[%s4533_s5] sm:$0xff]  ;;  %v162_v40 = vld [vmem:[%s4533_s5 + $0x8] sm:$0xff]  ;;  %v164_v46 = vld [vmem:[%s4533_s5 + $0x18] sm:$0xff]  ;;  %vm2626_vm5 = vcmask 64512  }
   0xc   :  { %2921 = vmatprep.subr.bf16.mxu1 %v3213_v33  ;;  %v3215_v52 = vld [vmem:[%s4534_s6 + $0x20] sm:$0xff]   ;;  %v217_v55 = vsub.s32 0, %v3614_v54  ;;  %v288_v58 = vsub.s32 1, %v3614_v54  ;;  %v353_v61 = vsub.s32 2, %v3614_v54 }
   0xd   :  { %v3620_v56 = vld [vmem:[%s4535_s7] sm:$0xff] }
   0xe   :  { %2914 = vmatpush3.bf16.msra.mxu0 %v3209_v9  ;;  %v218_v57 = vrot.slane %v3620_v56, %v217_v55  ;;  %v289_v63 = vrot.slane %v3620_v56, %v288_v58  ;;  %v3633_v2 = vld [vmem:[%s4539_s11] ss:$0 sm:$0xff]  ;;  %v3638_v3 = vld [vmem:[%s4539_s11 + $0x1] ss:$0 sm:$0xff]  ;;  %v3643_v4 = vld [vmem:[%s4539_s11 + $0x2] ss:$0 sm:$0xff] }
   0xf   :  { %2927 = vmatprep.subr.bf16.mxu0 %v3210_v30  ;;  %2922 = vmatpush3.bf16.msra.mxu1 %v3213_v33 }
  0x10   :  { %2935 = vmatprep.subr.bf16.mxu1 %v3214_v34 }
  0x7e   :  { %v81_v22 = vpop.permute.xlu1 %80 }
  0x82   :  { %v3562_v27 = vpop.permute.xlu1 %87 }
  0x8c   :  { %v56_v10 = vpop.xlane.xlu0 %55 }
  0x8d   :  { %v3554_v11 = vmul.f32 0.03125, %v56_v10  ;;  %v354_v10 = vrot.slane %v3620_v56, %v353_v61 }
  0x8f   :  { %v64_v13 = vmul.f32 %v3554_v11, %v3554_v11  ;;  %v74_v23 = vsub.f32 %v52_v0, %v3554_v11 }
  0x90   :  { %v62_v12 = vpop.xlane.xlu0 %61 }
  0x91   :  { %v63_v14 = vmul.f32 0.03125, %v62_v12 }
  0x93   :  { %v65_v15 = vsub.f32 %v63_v14, %v64_v13 }
  0x95   :  { %v66_v16 = vadd.f32 1e-05, %v65_v15 }
  0x97   :  { %3246 = vrsqrt.f32 %v66_v16  ;;  %vm69_vm2 = vcmp.eq.f32.partialorder %v66_v16, inf  ;;  %v72_v19 = vand.u32 2147483648, %v66_v16  ;;  %vm71_vm3 = vcmp.eq.f32.partialorder %v66_v16, 0.0 }
  0xa4   :  { %v3247_v17 = vpop.eup %3246 }
  0xa5   :  { %v68_v18 = vmul.f32 %v3247_v17, %v66_v16 }
  0xa7   :  { %v70_v20 = vsel %vm69_vm2, %v66_v16, %v68_v18 }
  0xa8   :  { %v3558_v21 = vsel %vm71_vm3, %v72_v19, %v70_v20 }
  0xa9   :  { %3248 = vrcp.f32 %v3558_v21 }
  0xb6   :  { %v3249_v24 = vpop.eup %3248 }
  0xb7   :  { %v76_v25 = vmul.f32 %v3249_v24, %v74_v23 }
  0xb9   :  { %v83_v26 = vmul.f32 %v81_v22, %v76_v25 }
  0xbb   :  { %v90_v28 = vadd.f32 %v3562_v27, %v83_v26 }
  0xbd   :  { %v91_v29 = vpack.c.bf16 %v90_v28, %v90_v28 }
  0xbf   :  { %2916 = vmatmul.mubr.msk.bf16.vlgmr.msra.gmra.mxu0 %vm53_vm0, %v91_v29 }
  0xc0   :  { %2928 = vmatpush3.bf16.msra.mxu0 %v3210_v30 }
  0xc1   :  { %2929 = vmatprep.subr.bf16.mxu0 %v3212_v32 }
  0xc4   :  { %2930 = vmatpush3.bf16.msra.mxu0 %v3212_v32 }
 0x17f   :  { %v145_v35 = vpop.f32.mrf.mxu0 }
 0x180   :  { %155 = vrot.lane.b32.xlu1 %v145_v35, %s3449_s19  ;;  %152 = vrot.lane.b32.xlu0 %v145_v35, %s3450_s20  ;;  %v3587_v43 = vadd.f32 %v161_v39, %v145_v35 }
 0x181   :  { %v2917_v36 = vpop.f32.mrf.mxu0 }
 0x182   :  { %v2675_v36 = vld [vmem:[%s4539_s11 + $0x3] ss:$0 sm:$0xff] }
 0x183   :  { %v148_v37 = vpop.f32.mrf.mxu0 }
 0x184   :  { %158 = vrot.lane.b32.xlu1 %v145_v35, %s3451_s21 }
 0x185   :  { %v2918_v38 = vpop.f32.mrf.mxu0 }
 0x1f2   :  { %v156_v41 = vpop.permute.xlu1 %155  ;;  %v153_v42 = vpop.permute.xlu0 %152 }
 0x1f3   :  { %v3589_v44 = vadd.f32 %v162_v40, %v153_v42  ;;  %v3599_v49 = vadd.f32 %v163_v45, %v156_v41 }
 0x1f5   :  { %v213_v47 = vpack.c.bf16 %v3589_v44, %v3587_v43 }
 0x1f6   :  { %v159_v48 = vpop.permute.xlu1 %158 }
 0x1f7   :  { %v3601_v50 = vadd.f32 %v164_v46, %v159_v48  ;;  %2923 = vmatprep.mubr.msk.bf16.mxu1 %vm53_vm0, %v213_v47  ;;  %2931 = vmatprep.mubr.msk.bf16.mxu0 %vm53_vm0, %v213_v47 }
 0x1f9   :  { %v214_v51 = vpack.c.bf16 %v3601_v50, %v3599_v49 }
 0x1fb   :  { %2924 = vmatmul.mubr.msk.bf16.vlgmr.msra.gmra.mxu1 %vm53_vm0, %v214_v51  ;;  %2932 = vmatmul.mubr.msk.bf16.vlgmr.msra.gmra.mxu0 %vm53_vm0, %v214_v51 }
 0x1fc   :  { %2936 = vmatpush3.bf16.msra.mxu1 %v3214_v34  ;;  %2939 = vmatprep.mubr.msk.bf16.mxu1 %vm53_vm0, %v213_v47 }
 0x1fd   :  { %2937 = vmatprep.subr.bf16.mxu1 %v3215_v52 }
 0x200   :  { %2938 = vmatpush3.bf16.msra.mxu1 %v3215_v52 }
 0x203   :  { %2940 = vmatmul.mubr.msk.bf16.vlgmr.msra.gmra.mxu1 %vm53_vm0, %v214_v51 }
 0x2bb   :  { %v2925_v59 = vpop.f32.mrf.mxu1  ;;  %v2933_v60 = vpop.f32.mrf.mxu0 }
 0x2bc   :  { %v280_v62 = vadd.f32 %v2925_v59, %v218_v57  ;;  %v345_v14 = vadd.f32 %v2933_v60, %v289_v63 }
 0x2bd   :  { %v271_v0 = vpop.f32.mrf.mxu1  ;;  %v336_v1 = vpop.f32.mrf.mxu0 }
 0x2be   :  { %v3649_v12 = vmul.f32 %v3633_v2, %v280_v62  ;;  %v3652_v13 = vmul.f32 %v3638_v3, %v280_v62  ;;  %v3654_v15 = vadd.f32 %v271_v0, %v218_v57  ;;  %v3657_v18 = vmul.f32 %v3643_v4, %v280_v62 }
 0x2bf   :  { %v2926_v5 = vpop.f32.mrf.mxu1  ;;  %v2934_v6 = vpop.f32.mrf.mxu0  ;;  %v337_v28 = vadd.f32 %v336_v1, %v289_v63  ;;  %v3709_v51 = vmul.f32 %v2675_v36, %v280_v62 }
 0x2c0   :  { %v283_v7 = vadd.f32 %v2926_v5, %v218_v57  ;;  %v348_v9 = vadd.f32 %v2934_v6, %v289_v63  ;;  %v422_v32 = vmul.f32 %v3633_v2, %v3654_v15  ;;  %v3699_v40 = vmul.f32 %v3643_v4, %v3654_v15 }
 0x2c1   :  { %v274_v16 = vpop.f32.mrf.mxu1  ;;  %v339_v17 = vpop.f32.mrf.mxu0  ;;  %v3712_v52 = vmul.f32 %v2675_v36, %v3654_v15 }
 0x2c2   :  { %v3660_v19 = vmul.f32 %v3633_v2, %v283_v7  ;;  %v3663_v20 = vmul.f32 %v3638_v3, %v283_v7  ;;  %v3666_v22 = vmul.f32 %v3643_v4, %v283_v7  ;;  %v3668_v23 = vpack.c.bf16 %v348_v9, %v345_v14 }
 0x2c3   :  { %v3670_v24 = vadd.f32 %v274_v16, %v218_v57  ;;  %v340_v25 = vadd.f32 %v339_v17, %v289_v63  ;;  %v2941_v26 = vpop.f32.mrf.mxu1  ;;  %v3701_v41 = vmul.f32 %v2675_v36, %v283_v7 }
 0x2c4   :  { %v473_v29 = vpack.c.bf16 %v3660_v19, %v3649_v12  ;;  %v475_v30 = vpack.c.bf16 %v3663_v20, %v3652_v13  ;;  %v477_v31 = vpack.c.bf16 %v3666_v22, %v3657_v18  ;;  %3183 = vmatprep.subr.msk.bf16.mxu0 %vm53_vm0, %v3668_v23  ;;  %v410_v38 = vadd.f32 %v2941_v26, %v354_v10  ;;  %v176_v12 = vld [vmem:[%s4540_s12] sm:$0xff]  ;;  %v178_v19 = vld [vmem:[%s4540_s12 + $0x10] sm:$0xff]  ;;  %v177_v18 = vld [vmem:[%s4540_s12 + $0x8] sm:$0xff] }
 0x2c5   :  { %v423_v33 = vmul.f32 %v3633_v2, %v3670_v24  ;;  %v3684_v34 = vmul.f32 %v3643_v4, %v3670_v24  ;;  %v401_v35 = vpop.f32.mrf.mxu1  ;;  %v3691_v37 = vpack.c.bf16 %v340_v25, %v337_v28  ;;  %v3695_v39 = vsel %vm53_vm0, %v3668_v23, 0 }
 0x2c6   :  { %v3704_v42 = vmul.f32 %v2675_v36, %v3670_v24  ;;  %2944 = vmatpush3.bf16.xpose.msra.mxu0 %v3695_v39  ;;  %v402_v47 = vadd.f32 %v401_v35, %v354_v10  ;;  %v470_v60 = vmul.f32 %v2675_v36, %v410_v38  ;;  %v479_v1 = vpack.c.bf16 %v3701_v41, %v3709_v51 }
 0x2c7   :  { %v2942_v45 = vpop.f32.mrf.mxu1  ;;  %v472_v46 = vpack.c.bf16 %v423_v33, %v422_v32  ;;  %3184 = vmatprep.subr.msk.bf16.mxu0 %vm53_vm0, %v3691_v37  ;;  %v476_v57 = vpack.c.bf16 %v3684_v34, %v3699_v40  ;;  %v507_v7 = vsel %vm53_vm0, %v3691_v37, 0  ;;  %v462_v32 = vmul.f32 %v3638_v3, %v410_v38  ;;  %v181_v40 = vld [vmem:[%s4540_s12 + $0x28] sm:$0xff] }
 0x2c8   :  { %v413_v48 = vadd.f32 %v2942_v45, %v354_v10  ;;  %v478_v0 = vpack.c.bf16 %v3704_v42, %v3712_v52  ;;  %v468_v5 = vmul.f32 %v2675_v36, %v402_v47  ;;  %v464_v25 = vmul.f32 %v3643_v4, %v402_v47 }
 0x2c9   :  { %2959 = vmatprep.mubr.msk.bf16.mxu0 %vm53_vm0, %v472_v46  ;;  %v404_v53 = vpop.f32.mrf.mxu1  ;;  %v458_v42 = vmul.f32 %v3633_v2, %v410_v38  ;;  %v456_v51 = vmul.f32 %v3633_v2, %v402_v47 }
 0x2ca   :  { %v405_v59 = vadd.f32 %v404_v53, %v354_v10  ;;  %v471_v63 = vmul.f32 %v2675_v36, %v413_v48  ;;  %v467_v14 = vmul.f32 %v3643_v4, %v413_v48  ;;  %v466_v10 = vmul.f32 %v3643_v4, %v410_v38 }
 0x2cb   :  { %v463_v28 = vmul.f32 %v3638_v3, %v413_v48  ;;  %v459_v41 = vmul.f32 %v3633_v2, %v413_v48  ;;  %v432_v38 = vmul.f32 %v3638_v3, %v3654_v15 }
 0x2cc   :  { %v768_v62 = vpack.c.bf16 %v471_v63, %v470_v60  ;;  %v469_v6 = vmul.f32 %v2675_v36, %v405_v59  ;;  %v766_v16 = vpack.c.bf16 %v467_v14, %v466_v10  ;;  %v465_v17 = vmul.f32 %v3643_v4, %v405_v59  ;;  %v183_v60 = vld [vmem:[%s4540_s12 + $0x38] sm:$0xff] }
 0x2cd   :  { %v764_v33 = vpack.c.bf16 %v463_v28, %v462_v32  ;;  %v461_v35 = vmul.f32 %v3638_v3, %v405_v59  ;;  %v460_v36 = vmul.f32 %v3638_v3, %v402_v47  ;;  %v762_v45 = vpack.c.bf16 %v459_v41, %v458_v42 }
 0x2ce   :  { %2975 = vmatprep.subr.bf16.mxu1 %v768_v62  ;;  %v767_v9 = vpack.c.bf16 %v469_v6, %v468_v5  ;;  %2946 = vmatpush3.bf16.xpose.msra.mxu0 %v507_v7  ;;  %v765_v26 = vpack.c.bf16 %v465_v17, %v464_v25  ;;  %v457_v46 = vmul.f32 %v3633_v2, %v405_v59  ;;  %v182_v59 = vld [vmem:[%s4540_s12 + $0x30] sm:$0xff]  ;;  %v184_v5 = vld [vmem:[%s4540_s12 + $0x40] sm:$0xff]  ;;  %v187_v17 = vld [vmem:[%s4540_s12 + $0x58] sm:$0xff] }
 0x2cf   :  { %2976 = vmatpush3.bf16.msra.mxu1 %v768_v62  ;;  %3185 = vmatprep.subr.msk.bf16.mxu0 %vm53_vm0, %v3668_v23  ;;  %v763_v4 = vpack.c.bf16 %v461_v35, %v460_v36  ;;  %v433_v2 = vmul.f32 %v3638_v3, %v3670_v24  ;;  %v189_v36 = vld [vmem:[%s4540_s12 + $0x68] sm:$0xff] }
 0x2d0   :  { %2977 = vmatprep.subr.bf16.mxu1 %v767_v9  ;;  %v761_v52 = vpack.c.bf16 %v457_v46, %v456_v51  ;;  %v191_v46 = vld [vmem:[%s4540_s12 + $0x78] sm:$0xff] }
 0x2d1   :  { %v474_v47 = vpack.c.bf16 %v433_v2, %v432_v38 }
 0x2d3   :  { %2978 = vmatpush3.bf16.msra.mxu1 %v767_v9 }
 0x2d4   :  { %2979 = vmatprep.subr.bf16.mxu1 %v766_v16 }
 0x2d6   :  { %2948 = vmatpush3.bf16.xpose.msra.mxu0 %v3695_v39 }
 0x2d7   :  { %2980 = vmatpush3.bf16.msra.mxu1 %v766_v16  ;;  %3186 = vmatprep.subr.msk.bf16.mxu0 %vm53_vm0, %v3691_v37  ;;  %v186_v16 = vld [vmem:[%s4540_s12 + $0x50] sm:$0xff] }
 0x2d8   :  { %2981 = vmatprep.subr.bf16.mxu1 %v765_v26 }
 0x2db   :  { %2982 = vmatpush3.bf16.msra.mxu1 %v765_v26 }
 0x2dc   :  { %2983 = vmatprep.subr.bf16.mxu1 %v764_v33 }
 0x2de   :  { %2950 = vmatpush3.bf16.xpose.msra.mxu0 %v507_v7 }
 0x2df   :  { %2984 = vmatpush3.bf16.msra.mxu1 %v764_v33  ;;  %3187 = vmatprep.subr.msk.bf16.mxu0 %vm53_vm0, %v3668_v23  ;;  %v188_v33 = vld [vmem:[%s4540_s12 + $0x60] sm:$0xff] }
 0x2e0   :  { %2985 = vmatprep.subr.bf16.mxu1 %v763_v4 }
 0x2e3   :  { %2986 = vmatpush3.bf16.msra.mxu1 %v763_v4 }
 0x2e4   :  { %2987 = vmatprep.subr.bf16.mxu1 %v762_v45 }
 0x2e6   :  { %2952 = vmatpush3.bf16.xpose.msra.mxu0 %v3695_v39 }
 0x2e7   :  { %2988 = vmatpush3.bf16.msra.mxu1 %v762_v45  ;;  %3188 = vmatprep.subr.msk.bf16.mxu0 %vm53_vm0, %v3691_v37  ;;  %v190_v45 = vld [vmem:[%s4540_s12 + $0x70] sm:$0xff] }
 0x2e8   :  { %2989 = vmatprep.subr.bf16.mxu1 %v761_v52 }
 0x2eb   :  { %2990 = vmatpush3.bf16.msra.mxu1 %v761_v52 }
 0x2ee   :  { %2954 = vmatpush3.bf16.xpose.msra.mxu0 %v507_v7 }
 0x2ef   :  { %3189 = vmatprep.subr.msk.bf16.mxu0 %vm53_vm0, %v3668_v23 }
 0x2f6   :  { %2956 = vmatpush3.bf16.xpose.msra.mxu0 %v3695_v39 }
 0x2f7   :  { %3190 = vmatprep.subr.msk.bf16.mxu0 %vm53_vm0, %v3691_v37  ;;  %v180_v37 = vld [vmem:[%s4540_s12 + $0x20] sm:$0xff] }
 0x2fe   :  { %2958 = vmatpush3.bf16.xpose.msra.mxu0 %v507_v7  ;;  %v185_v7 = vld [vmem:[%s4540_s12 + $0x48] sm:$0xff] }
 0x305   :  { %2960 = vmatmul.mubr.msk.bf16.vlgmr.msra.gmra.mxu0 %vm53_vm0, %v473_v29  ;;  %v179_v29 = vld [vmem:[%s4540_s12 + $0x18] sm:$0xff] }
 0x306   :  { %2963 = vmatprep.mubr.msk.bf16.mxu0 %vm53_vm0, %v474_v47 }
 0x30d   :  { %2964 = vmatmul.mubr.msk.bf16.gmra.mxu0 %vm53_vm0, %v475_v30 }
 0x30e   :  { %2967 = vmatprep.mubr.msk.bf16.mxu0 %vm53_vm0, %v476_v57 }
 0x315   :  { %2968 = vmatmul.mubr.msk.bf16.gmra.mxu0 %vm53_vm0, %v477_v31 }
 0x316   :  { %2971 = vmatprep.mubr.msk.bf16.mxu0 %vm53_vm0, %v478_v0 }
 0x31d   :  { %2972 = vmatmul.mubr.msk.bf16.gmra.mxu0 %vm53_vm0, %v479_v1 }
 0x3c5   :  { %v2961_v3 = vpop.f32.mrf.mxu0 }
 0x3c6   :  { %v3785_v23 = vadd.f32 %v2961_v3, %v178_v19 }
 0x3c7   :  { %v546_v13 = vpop.f32.mrf.mxu0 }
 0x3c8   :  { %v3776_v15 = vadd.f32 %v546_v13, %v176_v12 }
 0x3c9   :  { %v2962_v20 = vpop.f32.mrf.mxu0 }
 0x3ca   :  { %609 = vmax.xlane.f32.xlu1 %v3776_v15  ;;  %v558_v34 = vadd.f32 %v2962_v20, %v179_v29 }
 0x3cb   :  { %v549_v22 = vpop.f32.mrf.mxu0 }
 0x3cc   :  { %v550_v24 = vadd.f32 %v549_v22, %v177_v18 }
 0x3cd   :  { %v2965_v30 = vpop.f32.mrf.mxu0 }
 0x3ce   :  { %611 = vmax.xlane.f32.xlu0 %v550_v24  ;;  %613 = vmax.xlane.f32.xlu1 %v3785_v23  ;;  %v3806_v1 = vadd.f32 %v2965_v30, %v182_v59 }
 0x3cf   :  { %v562_v31 = vpop.f32.mrf.mxu0 }
 0x3d0   :  { %v3797_v53 = vadd.f32 %v562_v31, %v180_v37 }
 0x3d1   :  { %v2966_v39 = vpop.f32.mrf.mxu0 }
 0x3d2   :  { %615 = vmax.xlane.f32.xlu1 %v558_v34  ;;  %v574_v62 = vadd.f32 %v2966_v39, %v183_v60 }
 0x3d3   :  { %v565_v48 = vpop.f32.mrf.mxu0 }
 0x3d4   :  { %v566_v57 = vadd.f32 %v565_v48, %v181_v40 }
 0x3d5   :  { %v2969_v63 = vpop.f32.mrf.mxu0 }
 0x3d6   :  { %619 = vmax.xlane.f32.xlu0 %v566_v57  ;;  %617 = vmax.xlane.f32.xlu1 %v3797_v53  ;;  %v3827_v28 = vadd.f32 %v2969_v63, %v186_v16 }
 0x3d7   :  { %v578_v0 = vpop.f32.mrf.mxu0 }
 0x3d8   :  { %v3815_v14 = vadd.f32 %v578_v0, %v184_v5 }
 0x3d9   :  { %v2970_v6 = vpop.f32.mrf.mxu0 }
 0x3da   :  { %623 = vmax.xlane.f32.xlu0 %v574_v62  ;;  %621 = vmax.xlane.f32.xlu1 %v3806_v1  ;;  %v3829_v32 = vadd.f32 %v2970_v6, %v187_v17 }
 0x3db   :  { %v581_v9 = vpop.f32.mrf.mxu0 }
 0x3dc   :  { %v3817_v10 = vadd.f32 %v581_v9, %v185_v7 }
 0x3dd   :  { %v2973_v25 = vpop.f32.mrf.mxu0 }
 0x3de   :  { %627 = vmax.xlane.f32.xlu0 %v3817_v10  ;;  %625 = vmax.xlane.f32.xlu1 %v3815_v14  ;;  %v3851_v51 = vadd.f32 %v2973_v25, %v190_v45 }
 0x3df   :  { %v594_v26 = vpop.f32.mrf.mxu0 }
 0x3e0   :  { %v3839_v41 = vadd.f32 %v594_v26, %v188_v33 }
 0x3e1   :  { %v2974_v35 = vpop.f32.mrf.mxu0 }
 0x3e2   :  { %631 = vmax.xlane.f32.xlu0 %v3829_v32  ;;  %629 = vmax.xlane.f32.xlu1 %v3827_v28  ;;  %v3853_v52 = vadd.f32 %v2974_v35, %v191_v46 }
 0x3e3   :  { %v597_v4 = vpop.f32.mrf.mxu0 }
 0x3e4   :  { %v3841_v42 = vadd.f32 %v597_v4, %v189_v36 }
 0x3e6   :  { %635 = vmax.xlane.f32.xlu0 %v3841_v42  ;;  %633 = vmax.xlane.f32.xlu1 %v3839_v41 }
 0x3ea   :  { %639 = vmax.xlane.f32.xlu0 %v3853_v52  ;;  %637 = vmax.xlane.f32.xlu1 %v3851_v51 }
 0x453   :  { %v610_v2 = vpop.xlane.xlu1 %609 }
 0x454   :  { %v641_v38 = vsub.f32 %v3776_v15, %v610_v2 }
 0x456   :  { %v657_v47 = vmul.f32 1.442695, %v641_v38 }
 0x457   :  { %v612_v3 = vpop.xlane.xlu0 %611  ;;  %v614_v12 = vpop.xlane.xlu1 %613 }
 0x458   :  { %3250 = vpow2.f32 %v657_v47  ;;  %v642_v13 = vsub.f32 %v550_v24, %v612_v3  ;;  %v643_v19 = vsub.f32 %v3785_v23, %v614_v12 }
 0x45a   :  { %v659_v20 = vmul.f32 1.442695, %v642_v13  ;;  %v661_v18 = vmul.f32 1.442695, %v643_v19 }
 0x45b   :  { %v616_v22 = vpop.xlane.xlu1 %615 }
 0x45c   :  { %3252 = vpow2.f32 %v659_v20  ;;  %v644_v29 = vsub.f32 %v558_v34, %v616_v22 }
 0x45d   :  { %3254 = vpow2.f32 %v661_v18 }
 0x45e   :  { %v663_v30 = vmul.f32 1.442695, %v644_v29 }
 0x45f   :  { %v620_v31 = vpop.xlane.xlu0 %619  ;;  %v618_v37 = vpop.xlane.xlu1 %617 }
 0x460   :  { %3256 = vpow2.f32 %v663_v30  ;;  %v646_v39 = vsub.f32 %v566_v57, %v620_v31  ;;  %v645_v15 = vsub.f32 %v3797_v53, %v618_v37 }
 0x462   :  { %v667_v40 = vmul.f32 1.442695, %v646_v39  ;;  %v665_v48 = vmul.f32 1.442695, %v645_v15 }
 0x463   :  { %v624_v59 = vpop.xlane.xlu0 %623  ;;  %v622_v60 = vpop.xlane.xlu1 %621 }
 0x464   :  { %3258 = vpow2.f32 %v667_v40  ;;  %v648_v24 = vsub.f32 %v574_v62, %v624_v59  ;;  %v647_v23 = vsub.f32 %v3806_v1, %v622_v60 }
 0x465   :  { %v3861_v63 = vpop.eup %3250  ;;  %3260 = vpow2.f32 %v665_v48 }
 0x466   :  { %v671_v34 = vmul.f32 1.442695, %v648_v24  ;;  %v669_v0 = vmul.f32 1.442695, %v647_v23  ;;  %689 = vadd.xlane.f32.xlu1 %v3861_v63 }
 0x467   :  { %v628_v5 = vpop.xlane.xlu0 %627  ;;  %v626_v6 = vpop.xlane.xlu1 %625 }
 0x468   :  { %3262 = vpow2.f32 %v671_v34  ;;  %v650_v53 = vsub.f32 %v3817_v10, %v628_v5  ;;  %v649_v57 = vsub.f32 %v3815_v14, %v626_v6 }
 0x469   :  { %v3866_v7 = vpop.eup %3252  ;;  %3264 = vpow2.f32 %v669_v0 }
 0x46a   :  { %v3868_v62 = vpop.eup %3254  ;;  %v675_v1 = vmul.f32 1.442695, %v650_v53  ;;  %v673_v9 = vmul.f32 1.442695, %v649_v57  ;;  %691 = vadd.xlane.f32.xlu0 %v3866_v7 }
 0x46b   :  { %693 = vadd.xlane.f32.xlu1 %v3868_v62  ;;  %v632_v16 = vpop.xlane.xlu0 %631  ;;  %v630_v17 = vpop.xlane.xlu1 %629 }
 0x46c   :  { %3266 = vpow2.f32 %v675_v1  ;;  %v652_v25 = vsub.f32 %v3829_v32, %v632_v16  ;;  %v651_v10 = vsub.f32 %v3827_v28, %v630_v17 }
 0x46d   :  { %v3874_v26 = vpop.eup %3256  ;;  %3268 = vpow2.f32 %v673_v9 }
 0x46e   :  { %v679_v14 = vmul.f32 1.442695, %v652_v25  ;;  %v677_v33 = vmul.f32 1.442695, %v651_v10  ;;  %695 = vadd.xlane.f32.xlu0 %v3874_v26 }
 0x46f   :  { %v636_v35 = vpop.xlane.xlu0 %635  ;;  %v634_v36 = vpop.xlane.xlu1 %633 }
 0x470   :  { %3270 = vpow2.f32 %v679_v14  ;;  %v654_v4 = vsub.f32 %v3841_v42, %v636_v35  ;;  %v653_v45 = vsub.f32 %v3839_v41, %v634_v36 }
 0x471   :  { %v3879_v46 = vpop.eup %3258  ;;  %3272 = vpow2.f32 %v677_v33 }
 0x472   :  { %v3881_v32 = vpop.eup %3260  ;;  %v683_v28 = vmul.f32 1.442695, %v654_v4  ;;  %v681_v2 = vmul.f32 1.442695, %v653_v45  ;;  %699 = vadd.xlane.f32.xlu0 %v3879_v46 }
 0x473   :  { %697 = vadd.xlane.f32.xlu1 %v3881_v32  ;;  %v640_v38 = vpop.xlane.xlu0 %639  ;;  %v638_v47 = vpop.xlane.xlu1 %637 }
 0x474   :  { %3274 = vpow2.f32 %v683_v28  ;;  %v656_v3 = vsub.f32 %v3853_v52, %v640_v38  ;;  %v655_v42 = vsub.f32 %v3851_v51, %v638_v47 }
 0x475   :  { %v3887_v12 = vpop.eup %3262  ;;  %3276 = vpow2.f32 %v681_v2 }
 0x476   :  { %v3889_v41 = vpop.eup %3264  ;;  %v687_v13 = vmul.f32 1.442695, %v656_v3  ;;  %v685_v19 = vmul.f32 1.442695, %v655_v42  ;;  %703 = vadd.xlane.f32.xlu0 %v3887_v12 }
 0x477   :  { %701 = vadd.xlane.f32.xlu1 %v3889_v41 }
 0x478   :  { %3278 = vpow2.f32 %v687_v13 }
 0x479   :  { %v3893_v20 = vpop.eup %3266  ;;  %3280 = vpow2.f32 %v685_v19 }
 0x47a   :  { %v3895_v18 = vpop.eup %3268  ;;  %707 = vadd.xlane.f32.xlu0 %v3893_v20 }
 0x47b   :  { %705 = vadd.xlane.f32.xlu1 %v3895_v18 }
 0x47d   :  { %v3899_v51 = vpop.eup %3270 }
 0x47e   :  { %v3901_v52 = vpop.eup %3272  ;;  %711 = vadd.xlane.f32.xlu0 %v3899_v51 }
 0x47f   :  { %709 = vadd.xlane.f32.xlu1 %v3901_v52 }
 0x481   :  { %v3905_v22 = vpop.eup %3274 }
 0x482   :  { %v3907_v29 = vpop.eup %3276  ;;  %715 = vadd.xlane.f32.xlu0 %v3905_v22 }
 0x483   :  { %713 = vadd.xlane.f32.xlu1 %v3907_v29 }
 0x485   :  { %v3911_v30 = vpop.eup %3278 }
 0x486   :  { %v3913_v31 = vpop.eup %3280  ;;  %719 = vadd.xlane.f32.xlu0 %v3911_v30 }
 0x487   :  { %717 = vadd.xlane.f32.xlu1 %v3913_v31 }
 0x4ef   :  { %v690_v37 = vpop.xlane.xlu1 %689 }
 0x4f0   :  { %3282 = vrcp.f32 %v690_v37 }
 0x4f3   :  { %v692_v39 = vpop.xlane.xlu0 %691 }
 0x4f4   :  { %3284 = vrcp.f32 %v692_v39  ;;  %v694_v15 = vpop.xlane.xlu1 %693 }
 0x4f5   :  { %3286 = vrcp.f32 %v694_v15 }
 0x4f7   :  { %v696_v40 = vpop.xlane.xlu0 %695 }
 0x4f8   :  { %3288 = vrcp.f32 %v696_v40 }
 0x4fb   :  { %v700_v48 = vpop.xlane.xlu0 %699 }
 0x4fc   :  { %3290 = vrcp.f32 %v700_v48  ;;  %v698_v59 = vpop.xlane.xlu1 %697 }
 0x4fd   :  { %3292 = vrcp.f32 %v698_v59  ;;  %v3283_v60 = vpop.eup %3282 }
 0x4fe   :  { %v737_v0 = vmul.f32 %v3283_v60, %v3861_v63 }
 0x4ff   :  { %v704_v24 = vpop.xlane.xlu0 %703 }
 0x500   :  { %3294 = vrcp.f32 %v704_v24  ;;  %v702_v23 = vpop.xlane.xlu1 %701 }
 0x501   :  { %v3285_v34 = vpop.eup %3284  ;;  %3296 = vrcp.f32 %v702_v23 }
 0x502   :  { %v738_v5 = vmul.f32 %v3285_v34, %v3866_v7  ;;  %v3287_v6 = vpop.eup %3286 }
 0x503   :  { %v708_v53 = vpop.xlane.xlu0 %707  ;;  %v739_v16 = vmul.f32 %v3287_v6, %v3868_v62 }
 0x504   :  { %3298 = vrcp.f32 %v708_v53  ;;  %v706_v57 = vpop.xlane.xlu1 %705  ;;  %v753_v1 = vpack.c.bf16 %v738_v5, %v737_v0 }
 0x505   :  { %v3289_v9 = vpop.eup %3288  ;;  %3300 = vrcp.f32 %v706_v57 }
 0x506   :  { %2991 = vmatprep.mubr.bf16.mxu1 %v753_v1  ;;  %v740_v17 = vmul.f32 %v3289_v9, %v3874_v26 }
 0x507   :  { %v712_v25 = vpop.xlane.xlu0 %711 }
 0x508   :  { %3302 = vrcp.f32 %v712_v25  ;;  %v710_v10 = vpop.xlane.xlu1 %709  ;;  %v754_v14 = vpack.c.bf16 %v740_v17, %v739_v16 }
 0x509   :  { %v3291_v33 = vpop.eup %3290  ;;  %3304 = vrcp.f32 %v710_v10 }
 0x50a   :  { %v3293_v63 = vpop.eup %3292  ;;  %2992 = vmatmul.mubr.bf16.vlgmr.msra.gmra.mxu1 %v754_v14  ;;  %v742_v7 = vmul.f32 %v3291_v33, %v3879_v46 }
 0x50b   :  { %v716_v35 = vpop.xlane.xlu0 %715  ;;  %v741_v36 = vmul.f32 %v3293_v63, %v3881_v32 }
 0x50c   :  { %3306 = vrcp.f32 %v716_v35  ;;  %v714_v4 = vpop.xlane.xlu1 %713 }
 0x50d   :  { %v3295_v45 = vpop.eup %3294  ;;  %3308 = vrcp.f32 %v714_v4  ;;  %v755_v62 = vpack.c.bf16 %v742_v7, %v741_v36 }
 0x50e   :  { %v3297_v28 = vpop.eup %3296  ;;  %v744_v26 = vmul.f32 %v3295_v45, %v3887_v12 }
 0x50f   :  { %2995 = vmatprep.mubr.bf16.mxu1 %v755_v62  ;;  %v720_v2 = vpop.xlane.xlu0 %719  ;;  %v743_v38 = vmul.f32 %v3297_v28, %v3889_v41 }
 0x510   :  { %3310 = vrcp.f32 %v720_v2  ;;  %v718_v47 = vpop.xlane.xlu1 %717 }
 0x511   :  { %v3299_v3 = vpop.eup %3298  ;;  %3312 = vrcp.f32 %v718_v47  ;;  %v756_v46 = vpack.c.bf16 %v744_v26, %v743_v38 }
 0x512   :  { %v3301_v42 = vpop.eup %3300  ;;  %v746_v32 = vmul.f32 %v3299_v3, %v3893_v20 }
 0x513   :  { %2996 = vmatmul.mubr.bf16.gmra.mxu1 %v756_v46  ;;  %v745_v13 = vmul.f32 %v3301_v42, %v3895_v18  ;;  %v3218_v42 = vld [vmem:[%s4536_s8 + $0x8] sm:$0xff]  }
 0x515   :  { %v3303_v19 = vpop.eup %3302  ;;  %v757_v37 = vpack.c.bf16 %v746_v32, %v745_v13  ;;  %v3219_v32 = vld [vmem:[%s4536_s8] sm:$0xff]   ;;  %v882_v13 = vsub.s32 3, %v3614_v54 }
 0x516   :  { %v3305_v39 = vpop.eup %3304  ;;  %v748_v12 = vmul.f32 %v3303_v19, %v3899_v51 }
 0x517   :  { %2999 = vmatprep.mubr.bf16.mxu1 %v757_v37  ;;  %v747_v15 = vmul.f32 %v3305_v39, %v3901_v52  ;;  %v3216_v52 = vld [vmem:[%s4534_s6 + $0x38] sm:$0xff]   ;;  %v883_v19 = vrot.slane %v3620_v56, %v882_v13 }
 0x518   :  { %3007 = vmatprep.subr.bf16.mxu1 %v3216_v52 }
 0x519   :  { %v3307_v41 = vpop.eup %3306  ;;  %v758_v40 = vpack.c.bf16 %v748_v12, %v747_v15  ;;  %3008 = vmatpush3.bf16.msra.mxu1 %v3216_v52 }
 0x51a   :  { %v3309_v48 = vpop.eup %3308  ;;  %v750_v59 = vmul.f32 %v3307_v41, %v3905_v22  ;;  %v3217_v22 = vld [vmem:[%s4534_s6 + $0x30] sm:$0xff]  }
 0x51b   :  { %3000 = vmatmul.mubr.bf16.gmra.mxu1 %v758_v40  ;;  %v749_v60 = vmul.f32 %v3309_v48, %v3907_v29  ;;  %3009 = vmatprep.subr.bf16.mxu1 %v3217_v22 }
 0x51d   :  { %v3311_v20 = vpop.eup %3310  ;;  %v759_v24 = vpack.c.bf16 %v750_v59, %v749_v60  ;;  %3010 = vmatpush3.bf16.msra.mxu1 %v3217_v22 }
 0x51e   :  { %v3313_v23 = vpop.eup %3312  ;;  %v752_v18 = vmul.f32 %v3311_v20, %v3911_v30  ;;  %3015 = vmatprep.subr.bf16.mxu1 %v3218_v42 }
 0x51f   :  { %3003 = vmatprep.mubr.bf16.mxu1 %v759_v24  ;;  %v751_v34 = vmul.f32 %v3313_v23, %v3913_v31 }
 0x521   :  { %v760_v51 = vpack.c.bf16 %v752_v18, %v751_v34 }
 0x523   :  { %3004 = vmatmul.mubr.bf16.gmra.mxu1 %v760_v51 }
 0x5ca   :  { %v2993_v29 = vpop.f32.mrf.mxu1 }
 0x5cc   :  { %v803_v0 = vpop.f32.mrf.mxu1 }
 0x5ce   :  { %v2994_v30 = vpop.f32.mrf.mxu1 }
 0x5d0   :  { %v806_v5 = vpop.f32.mrf.mxu1 }
 0x5d3   :  { %v2997_v6 = vpop.f32.mrf.mxu1 }
 0x5d4   :  { %v868_v7 = vadd.f32 %v2997_v6, %v2993_v29 }
 0x5d5   :  { %v819_v31 = vpop.f32.mrf.mxu1 }
 0x5d6   :  { %v866_v33 = vadd.f32 %v819_v31, %v803_v0 }
 0x5d7   :  { %v2998_v53 = vpop.f32.mrf.mxu1 }
 0x5d8   :  { %v869_v10 = vadd.f32 %v2998_v53, %v2994_v30 }
 0x5d9   :  { %v822_v57 = vpop.f32.mrf.mxu1 }
 0x5da   :  { %v867_v63 = vadd.f32 %v822_v57, %v806_v5 }
 0x5db   :  { %v3001_v1 = vpop.f32.mrf.mxu1 }
 0x5dc   :  { %v872_v62 = vadd.f32 %v3001_v1, %v868_v7 }
 0x5dd   :  { %v835_v9 = vpop.f32.mrf.mxu1 }
 0x5de   :  { %v870_v4 = vadd.f32 %v866_v33, %v835_v9 }
 0x5df   :  { %v3002_v16 = vpop.f32.mrf.mxu1 }
 0x5e0   :  { %v873_v35 = vadd.f32 %v3002_v16, %v869_v10 }
 0x5e1   :  { %v838_v17 = vpop.f32.mrf.mxu1 }
 0x5e2   :  { %v871_v45 = vadd.f32 %v867_v63, %v838_v17 }
 0x5e3   :  { %v3005_v25 = vpop.f32.mrf.mxu1 }
 0x5e4   :  { %v876_v47 = vadd.f32 %v3005_v25, %v872_v62 }
 0x5e5   :  { %v851_v14 = vpop.f32.mrf.mxu1 }
 0x5e6   :  { %v874_v2 = vadd.f32 %v870_v4, %v851_v14 }
 0x5e7   :  { %v3006_v36 = vpop.f32.mrf.mxu1 }
 0x5e8   :  { %v877_v28 = vadd.f32 %v3006_v36, %v873_v35 }
 0x5e9   :  { %v854_v26 = vpop.f32.mrf.mxu1 }
 0x5ea   :  { %v875_v38 = vadd.f32 %v871_v45, %v854_v26  ;;  %v879_v46 = vpack.c.bf16 %v877_v28, %v876_v47  ;;  %v1009_v47 = vsub.s32 6, %v3614_v54 }
 0x5ec   :  { %v878_v3 = vpack.c.bf16 %v875_v38, %v874_v2  ;;  %v1001_v38 = vsub.s32 5, %v3614_v54 }
 0x5ee   :  { %3011 = vmatprep.mubr.msk.bf16.mxu1 %vm53_vm0, %v878_v3  ;;  %v1002_v3 = vrot.slane %v3620_v56, %v1001_v38 }
 0x5ef   :  { %3012 = vmatmul.mubr.msk.bf16.vlgmr.msra.gmra.mxu1 %vm53_vm0, %v879_v46 }
 0x5f0   :  { %3016 = vmatpush3.bf16.msra.mxu1 %v3218_v42 }
 0x5f1   :  { %3017 = vmatprep.subr.bf16.mxu1 %v3219_v32 }
 0x5f4   :  { %3018 = vmatpush3.bf16.msra.mxu1 %v3219_v32 }
 0x6af   :  { %v3013_v37 = vpop.f32.mrf.mxu1 }
 0x6b0   :  { %v945_v15 = vadd.f32 %v3013_v37, %v883_v19 }
 0x6b1   :  { %v936_v39 = vpop.f32.mrf.mxu1 }
 0x6b2   :  { %v937_v12 = vadd.f32 %v936_v39, %v883_v19  ;;  %v953_v60 = vadd.f32 %v945_v15, %v3599_v49  ;;  %v1010_v39 = vrot.slane %v3620_v56, %v1009_v47 }
 0x6b3   :  { %v3014_v41 = vpop.f32.mrf.mxu1 }
 0x6b4   :  { %v951_v40 = vadd.f32 %v937_v12, %v3587_v43  ;;  %v948_v48 = vadd.f32 %v3014_v41, %v883_v19  ;;  %v971_v34 = vmul.f32 %v953_v60, %v953_v60  ;;  %v958_v0 = vsel %vm53_vm0, %v953_v60, 0.0 }
 0x6b5   :  { %v939_v59 = vpop.f32.mrf.mxu1 }
 0x6b6   :  { %v940_v20 = vadd.f32 %v939_v59, %v883_v19  ;;  %v969_v24 = vmul.f32 %v951_v40, %v951_v40  ;;  %v954_v23 = vadd.f32 %v948_v48, %v3601_v50  ;;  %v955_v51 = vsel %vm53_vm0, %v951_v40, 0.0 }
 0x6b7   :  { %v976_v50 = vsel %vm53_vm0, %v971_v34, 0.0 }
 0x6b8   :  { %v952_v18 = vadd.f32 %v940_v20, %v3589_v44  ;;  %v973_v43 = vsel %vm53_vm0, %v969_v24, 0.0  ;;  %v972_v30 = vmul.f32 %v954_v23, %v954_v23  ;;  %v960_v44 = vsel %vm53_vm0, %v954_v23, 0.0 }
 0x6ba   :  { %v956_v52 = vsel %vm53_vm0, %v952_v18, 0.0  ;;  %v970_v22 = vmul.f32 %v952_v18, %v952_v18  ;;  %v978_v57 = vsel %vm53_vm0, %v972_v30, 0.0 }
 0x6bb   :  { %v957_v29 = vadd.f32 %v956_v52, %v955_v51 }
 0x6bc   :  { %v974_v49 = vsel %vm53_vm0, %v970_v22, 0.0  ;;  %v3221_v22 = vld [vmem:[%s4538_s10 + $0x10] sm:$0xff]  }
 0x6bd   :  { %v959_v5 = vadd.f32 %v958_v0, %v957_v29  ;;  %v975_v6 = vadd.f32 %v974_v49, %v973_v43  ;;  %v3222_v29 = vld [vmem:[%s4538_s10 + $0x8] sm:$0xff]   ;;  %v3223_v0 = vld [vmem:[%s4538_s10] sm:$0xff]  }
 0x6be   :  { %v2688_v43 = vld [vmem:[%s4537_s9] ss:$0 sm:$0xff] }
 0x6bf   :  { %v961_v31 = vadd.f32 %v960_v44, %v959_v5  ;;  %v977_v53 = vadd.f32 %v976_v50, %v975_v6 }
 0x6c1   :  { %v962_v1 = vrot.slane %v961_v31, 4  ;;  %v979_v9 = vadd.f32 %v978_v57, %v977_v53 }
 0x6c3   :  { %v963_v16 = vadd.f32 %v962_v1, %v961_v31  ;;  %v980_v17 = vrot.slane %v979_v9, 4 }
 0x6c5   :  { %v964_v25 = vrot.slane %v963_v16, 2  ;;  %v981_v10 = vadd.f32 %v980_v17, %v979_v9 }
 0x6c7   :  { %v965_v14 = vadd.f32 %v964_v25, %v963_v16  ;;  %v982_v33 = vrot.slane %v981_v10, 2 }
 0x6c9   :  { %v966_v63 = vrot.slane %v965_v14, 1  ;;  %v983_v7 = vadd.f32 %v982_v33, %v981_v10 }
 0x6cb   :  { %v967_v35 = vadd.f32 %v966_v63, %v965_v14  ;;  %v984_v36 = vrot.slane %v983_v7, 1 }
 0x6cd   :  { %v968_v4 = vmul.f32 0.03125, %v967_v35  ;;  %v985_v45 = vadd.f32 %v984_v36, %v983_v7 }
 0x6cf   :  { %v986_v62 = vmul.f32 0.03125, %v985_v45  ;;  %v987_v28 = vmul.f32 %v968_v4, %v968_v4  ;;  %v990_v46 = vsub.f32 %v952_v18, %v968_v4  ;;  %v989_v42 = vsub.f32 %v951_v40, %v968_v4  ;;  %v3220_v18 = vld [vmem:[%s4538_s10 + $0x18] sm:$0xff]  }
 0x6d0   :  { %v991_v32 = vsub.f32 %v953_v60, %v968_v4  ;;  %v992_v19 = vsub.f32 %v954_v23, %v968_v4  ;;  %3023 = vmatprep.subr.bf16.mxu1 %v3220_v18 }
 0x6d1   :  { %v988_v26 = vsub.f32 %v986_v62, %v987_v28 }
 0x6d3   :  { %v993_v2 = vadd.f32 1e-05, %v988_v26 }
 0x6d5   :  { %3314 = vrsqrt.f32 %v993_v2 }
 0x6e2   :  { %v3315_v37 = vpop.eup %3314 }
 0x6e3   :  { %v996_v12 = vmul.f32 %v3315_v37, %v990_v46  ;;  %v995_v15 = vmul.f32 %v3315_v37, %v989_v42  ;;  %v997_v41 = vmul.f32 %v3315_v37, %v991_v32  ;;  %v998_v48 = vmul.f32 %v3315_v37, %v992_v19 }
 0x6e5   :  { %v1004_v59 = vmul.f32 %v1002_v3, %v996_v12  ;;  %v1003_v20 = vmul.f32 %v1002_v3, %v995_v15  ;;  %v1005_v24 = vmul.f32 %v1002_v3, %v997_v41  ;;  %v1006_v34 = vmul.f32 %v1002_v3, %v998_v48 }
 0x6e7   :  { %v3971_v51 = vadd.f32 %v1010_v39, %v1003_v20  ;;  %v3973_v52 = vadd.f32 %v1010_v39, %v1004_v59  ;;  %v3975_v40 = vadd.f32 %v1010_v39, %v1005_v24  ;;  %v3977_v60 = vadd.f32 %v1010_v39, %v1006_v34 }
 0x6e9   :  { %v1015_v23 = vpack.c.bf16 %v3973_v52, %v3971_v51  ;;  %v1016_v56 = vpack.c.bf16 %v3977_v60, %v3975_v40 }
 0x6eb   :  { %3019 = vmatprep.mubr.msk.bf16.mxu1 %vm53_vm0, %v1015_v23 }
 0x6ec   :  { %3020 = vmatmul.mubr.msk.bf16.vlgmr.msra.gmra.mxu1 %vm53_vm0, %v1016_v56 }
 0x6ed   :  { %3024 = vmatpush3.bf16.msra.mxu1 %v3220_v18 }
 0x6ee   :  { %3025 = vmatprep.subr.bf16.mxu1 %v3221_v22 }
 0x6f1   :  { %3026 = vmatpush3.bf16.msra.mxu1 %v3221_v22 }
 0x6f2   :  { %3027 = vmatprep.subr.bf16.mxu1 %v3222_v29 }
 0x6f5   :  { %3028 = vmatpush3.bf16.msra.mxu1 %v3222_v29  ;;  %v3224_v29 = vld [vmem:[%s4534_s6 + $0x58] sm:$0xff]  }
 0x6f6   :  { %3029 = vmatprep.subr.bf16.mxu1 %v3223_v0 }
 0x6f9   :  { %3030 = vmatpush3.bf16.msra.mxu1 %v3223_v0  ;;  %v3225_v0 = vld [vmem:[%s4534_s6 + $0x48] sm:$0xff]  }
 0x6fa   :  { %3043 = vmatprep.subr.bf16.mxu1 %v3224_v29  ;;  %3035 = vmatprep.subr.bf16.mxu0 %v3225_v0 }
 0x6fb   :  { %3036 = vmatpush3.bf16.msra.mxu0 %v3225_v0 }
 0x7ac   :  { %v3021_v30 = vpop.f32.mrf.mxu1 }
 0x7ad   :  { %v1089_v49 = vadd.f32 %v3021_v30, %v2688_v43  ;;  %v3227_v30 = vld [vmem:[%s4534_s6 + $0x40] sm:$0xff]  }
 0x7ae   :  { %v1080_v5 = vpop.f32.mrf.mxu1  ;;  %3037 = vmatprep.subr.bf16.mxu0 %v3227_v30 }
 0x7af   :  { %v1097_v6 = vmul.f32 %v1089_v49, %v1089_v49  ;;  %v1081_v50 = vadd.f32 %v2688_v43, %v1080_v5  ;;  %3038 = vmatpush3.bf16.msra.mxu0 %v3227_v30  ;;  %v1143_v5 = vsub.s32 4, %v3614_v54 }
 0x7b0   :  { %v3022_v44 = vpop.f32.mrf.mxu1 }
 0x7b1   :  { %v1101_v31 = vmul.f32 %v1097_v6, %v1089_v49  ;;  %v1095_v53 = vmul.f32 %v1081_v50, %v1081_v50  ;;  %v1092_v57 = vadd.f32 %v3022_v44, %v2688_v43  ;;  %v3402_v6 = vld [vmem:[%s4535_s7] sm:$0xff] }
 0x7b2   :  { %v1083_v1 = vpop.f32.mrf.mxu1 }
 0x7b3   :  { %v1105_v9 = vmul.f32 0.044715, %v1101_v31  ;;  %v1099_v16 = vmul.f32 %v1095_v53, %v1081_v50  ;;  %v1098_v17 = vmul.f32 %v1092_v57, %v1092_v57  ;;  %v1084_v25 = vadd.f32 %v2688_v43, %v1083_v1  ;;  %v3226_v43 = vld [vmem:[%s4534_s6 + $0x50] sm:$0xff]  }
 0x7b5   :  { %v1109_v10 = vadd.f32 %v1105_v9, %v1089_v49  ;;  %v1103_v14 = vmul.f32 0.044715, %v1099_v16  ;;  %v1102_v33 = vmul.f32 %v1098_v17, %v1092_v57  ;;  %v1096_v63 = vmul.f32 %v1084_v25, %v1084_v25 }
 0x7b7   :  { %v1113_v7 = vmul.f32 0.7978846, %v1109_v10  ;;  %v1107_v35 = vadd.f32 %v1103_v14, %v1081_v50  ;;  %v1106_v36 = vmul.f32 0.044715, %v1102_v33  ;;  %v1100_v4 = vmul.f32 %v1096_v63, %v1084_v25 }
 0x7b9   :  { %v1111_v45 = vmul.f32 0.7978846, %v1107_v35  ;;  %v1110_v62 = vadd.f32 %v1106_v36, %v1092_v57  ;;  %v1104_v28 = vmul.f32 0.044715, %v1100_v4  ;;  %3316 = vtanh.f32 %v1113_v7 }
 0x7bb   :  { %3318 = vtanh.f32 %v1111_v45  ;;  %v1114_v26 = vmul.f32 0.7978846, %v1110_v62  ;;  %v1108_v2 = vadd.f32 %v1104_v28, %v1084_v25 }
 0x7bd   :  { %3320 = vtanh.f32 %v1114_v26  ;;  %v1112_v3 = vmul.f32 0.7978846, %v1108_v2 }
 0x7bf   :  { %3322 = vtanh.f32 %v1112_v3 }
 0x7c6   :  { %v3317_v46 = vpop.eup %3316 }
 0x7c7   :  { %v1121_v37 = vadd.f32 1.0, %v3317_v46 }
 0x7c8   :  { %v3319_v42 = vpop.eup %3318 }
 0x7c9   :  { %v1119_v32 = vadd.f32 1.0, %v3319_v42  ;;  %v1125_v59 = vmul.f32 0.5, %v1121_v37 }
 0x7ca   :  { %v3321_v19 = vpop.eup %3320 }
 0x7cb   :  { %v1122_v39 = vadd.f32 1.0, %v3321_v19  ;;  %v1123_v15 = vmul.f32 0.5, %v1119_v32  ;;  %v1129_v56 = vmul.f32 %v1125_v59, %v1089_v49  ;;  %v4017_v49 = vld [vmem:[%s4534_s6 + $0x68] sm:$0xff]  }
 0x7cc   :  { %v3323_v12 = vpop.eup %3322  ;;  %3051 = vmatprep.subr.bf16.mxu0 %v4017_v49 }
 0x7cd   :  { %v1126_v41 = vmul.f32 0.5, %v1122_v39  ;;  %v1120_v48 = vadd.f32 1.0, %v3323_v12  ;;  %v1127_v34 = vmul.f32 %v1123_v15, %v1081_v50  ;;  %v1144_v50 = vrot.slane %v3402_v6, %v1143_v5 }
 0x7cf   :  { %v1124_v20 = vmul.f32 0.5, %v1120_v48  ;;  %v1130_v24 = vmul.f32 %v1126_v41, %v1092_v57 }
 0x7d1   :  { %v1128_v23 = vmul.f32 %v1124_v20, %v1084_v25  ;;  %v1132_v22 = vpack.c.bf16 %v1130_v24, %v1129_v56 }
 0x7d3   :  { %v1131_v18 = vpack.c.bf16 %v1128_v23, %v1127_v34 }
 0x7d5   :  { %3031 = vmatprep.mubr.msk.bf16.mxu1 %vm1169_vm4, %v1131_v18 }
 0x7d6   :  { %3032 = vmatmul.mubr.msk.bf16.vlgmr.msra.gmra.mxu1 %vm1169_vm4, %v1132_v22 }
 0x7d7   :  { %3044 = vmatpush3.bf16.msra.mxu1 %v3224_v29 }
 0x7d8   :  { %3045 = vmatprep.subr.bf16.mxu1 %v3226_v43 }
 0x7db   :  { %3046 = vmatpush3.bf16.msra.mxu1 %v3226_v43  ;;  %v1275_v43 = vsub.s32 7, %v3614_v54  ;;  %v3242_v54 = vld [vmem:[%s4541_s13 + $0x28] sm:$0xff]  }
 0x7dd   :  { %v1276_v30 = vrot.slane %v3402_v6, %v1275_v43 }
 0x896   :  { %v3033_v44 = vpop.f32.mrf.mxu1 }
 0x897   :  { %v1219_v57 = vadd.f32 %v3033_v44, %v1144_v50 }
 0x898   :  { %v1210_v31 = vpop.f32.mrf.mxu1 }
 0x899   :  { %v1211_v53 = vadd.f32 %v1210_v31, %v1144_v50  ;;  %v1227_v25 = vadd.f32 %v1219_v57, %v3975_v40 }
 0x89a   :  { %v3034_v1 = vpop.f32.mrf.mxu1 }
 0x89b   :  { %v1225_v9 = vadd.f32 %v1211_v53, %v3971_v51  ;;  %v1222_v16 = vadd.f32 %v3034_v1, %v1144_v50  ;;  %v1245_v7 = vmul.f32 %v1227_v25, %v1227_v25  ;;  %v1232_v62 = vsel %vm53_vm0, %v1227_v25, 0.0 }
 0x89c   :  { %v1213_v17 = vpop.f32.mrf.mxu1 }
 0x89d   :  { %v1214_v10 = vadd.f32 %v1213_v17, %v1144_v50  ;;  %v1243_v14 = vmul.f32 %v1225_v9, %v1225_v9  ;;  %v1228_v33 = vadd.f32 %v1222_v16, %v3977_v60  ;;  %v1229_v35 = vsel %vm53_vm0, %v1225_v9, 0.0 }
 0x89e   :  { %v1250_v60 = vsel %vm53_vm0, %v1245_v7, 0.0 }
 0x89f   :  { %v1226_v63 = vadd.f32 %v1214_v10, %v3973_v52  ;;  %v1247_v51 = vsel %vm53_vm0, %v1243_v14, 0.0  ;;  %v1246_v28 = vmul.f32 %v1228_v33, %v1228_v33  ;;  %v1234_v52 = vsel %vm53_vm0, %v1228_v33, 0.0  ;;  %v2699_v14 = vld [vmem:[%s4535_s7 + $0x8] ss:$0 sm:$0xff] }
 0x8a1   :  { %v1230_v36 = vsel %vm53_vm0, %v1226_v63, 0.0  ;;  %v1244_v4 = vmul.f32 %v1226_v63, %v1226_v63  ;;  %v1252_v42 = vsel %vm53_vm0, %v1246_v28, 0.0 }
 0x8a2   :  { %v1231_v45 = vadd.f32 %v1230_v36, %v1229_v35 }
 0x8a3   :  { %v1248_v40 = vsel %vm53_vm0, %v1244_v4, 0.0 }
 0x8a4   :  { %v1233_v26 = vadd.f32 %v1232_v62, %v1231_v45  ;;  %v1249_v2 = vadd.f32 %v1248_v40, %v1247_v51  ;;  %v3229_v62 = vld [vmem:[%s4534_s6 + $0x60] sm:$0xff]   ;;  %v4069_v51 = vld [vmem:[%s4535_s7 + $0x10] sm:$0xff] }
 0x8a5   :  { %v1317_v28 = vrot.slane %v4069_v51, %v217_v55  ;;  %v4083_v55 = vld [vmem:[%s4539_s11] ss:$0 sm:$0xff] }
 0x8a6   :  { %v1235_v3 = vadd.f32 %v1234_v52, %v1233_v26  ;;  %v1251_v46 = vadd.f32 %v1250_v60, %v1249_v2 }
 0x8a8   :  { %v1236_v32 = vrot.slane %v1235_v3, 4  ;;  %v1253_v19 = vadd.f32 %v1252_v42, %v1251_v46 }
 0x8aa   :  { %v1237_v37 = vadd.f32 %v1236_v32, %v1235_v3  ;;  %v1254_v39 = vrot.slane %v1253_v19, 4 }
 0x8ac   :  { %v1238_v12 = vrot.slane %v1237_v37, 2  ;;  %v1255_v15 = vadd.f32 %v1254_v39, %v1253_v19  ;;  %v1453_v19 = vrot.slane %v4069_v51, %v353_v61 }
 0x8ae   :  { %v1239_v41 = vadd.f32 %v1238_v12, %v1237_v37  ;;  %v1256_v48 = vrot.slane %v1255_v15, 2 }
 0x8b0   :  { %v1240_v59 = vrot.slane %v1239_v41, 1  ;;  %v1257_v20 = vadd.f32 %v1256_v48, %v1255_v15  ;;  %v3405_v48 = vld [vmem:[%s4539_s11 + $0x2] ss:$0 sm:$0xff] }
 0x8b2   :  { %v1241_v24 = vadd.f32 %v1240_v59, %v1239_v41  ;;  %v1258_v34 = vrot.slane %v1257_v20, 1 }
 0x8b4   :  { %v1242_v23 = vmul.f32 0.03125, %v1241_v24  ;;  %v1259_v56 = vadd.f32 %v1258_v34, %v1257_v20 }
 0x8b6   :  { %v1260_v18 = vmul.f32 0.03125, %v1259_v56  ;;  %v1261_v22 = vmul.f32 %v1242_v23, %v1242_v23  ;;  %v1264_v50 = vsub.f32 %v1226_v63, %v1242_v23  ;;  %v1263_v44 = vsub.f32 %v1225_v9, %v1242_v23 }
 0x8b7   :  { %v1265_v31 = vsub.f32 %v1227_v25, %v1242_v23  ;;  %v1266_v53 = vsub.f32 %v1228_v33, %v1242_v23 }
 0x8b8   :  { %v1262_v29 = vsub.f32 %v1260_v18, %v1261_v22 }
 0x8ba   :  { %v1267_v0 = vadd.f32 1e-05, %v1262_v29 }
 0x8bc   :  { %3324 = vrsqrt.f32 %v1267_v0 }
 0x8c9   :  { %v3325_v57 = vpop.eup %3324 }
 0x8ca   :  { %v1270_v1 = vmul.f32 %v3325_v57, %v1264_v50  ;;  %v1269_v16 = vmul.f32 %v3325_v57, %v1263_v44  ;;  %v1271_v17 = vmul.f32 %v3325_v57, %v1265_v31  ;;  %v1272_v10 = vmul.f32 %v3325_v57, %v1266_v53 }
 0x8cc   :  { %v1278_v7 = vmul.f32 %v1276_v30, %v1270_v1  ;;  %v1277_v35 = vmul.f32 %v1276_v30, %v1269_v16  ;;  %v1279_v36 = vmul.f32 %v1276_v30, %v1271_v17  ;;  %v1280_v4 = vmul.f32 %v1276_v30, %v1272_v10 }
 0x8ce   :  { %v4044_v45 = vadd.f32 %v2699_v14, %v1277_v35  ;;  %v4046_v6 = vadd.f32 %v2699_v14, %v1278_v7  ;;  %v4048_v9 = vadd.f32 %v2699_v14, %v1279_v36  ;;  %v4050_v25 = vadd.f32 %v2699_v14, %v1280_v4  ;;  %v3406_v14 = vld [vmem:[%s4539_s11 + $0x3] ss:$0 sm:$0xff] }
 0x8d0   :  { %v1312_v33 = vpack.c.bf16 %v4046_v6, %v4044_v45  ;;  %v1313_v63 = vpack.c.bf16 %v4050_v25, %v4048_v9 }
 0x8d2   :  { %3039 = vmatprep.mubr.msk.bf16.mxu0 %vm53_vm0, %v1312_v33  ;;  %3047 = vmatprep.mubr.msk.bf16.mxu1 %vm53_vm0, %v1312_v33 }
 0x8d3   :  { %3040 = vmatmul.mubr.msk.bf16.vlgmr.msra.gmra.mxu0 %vm53_vm0, %v1313_v63  ;;  %3048 = vmatmul.mubr.msk.bf16.vlgmr.msra.gmra.mxu1 %vm53_vm0, %v1313_v63 }
 0x8d4   :  { %3052 = vmatpush3.bf16.msra.mxu0 %v4017_v49  ;;  %3055 = vmatprep.mubr.msk.bf16.mxu0 %vm53_vm0, %v1312_v33  ;;  %v1388_v49 = vrot.slane %v4069_v51, %v288_v58  ;;  %v4091_v58 = vld [vmem:[%s4539_s11 + $0x1] ss:$0 sm:$0xff]  ;;  %s2634_s11 = sshll.u32 %s3452_s17, 4  ;;  %s2635_s11 = int_to_ptr.vmem [resolvable:$true] %s2634_s11 }
 0x8d5   :  { %3053 = vmatprep.subr.bf16.mxu0 %v3229_v62  ;;  %p3429_p1 = scmp.lt.s32.totalorder %s2635_s11, %s2635_s11 }
 0x8d8   :  { %3054 = vmatpush3.bf16.msra.mxu0 %v3229_v62 }
 0x8db   :  { %3056 = vmatmul.mubr.msk.bf16.vlgmr.msra.gmra.mxu0 %vm53_vm0, %v1313_v63 }
 0x993   :  { %v3041_v40 = vpop.f32.mrf.mxu0  ;;  %v3049_v26 = vpop.f32.mrf.mxu1 }
 0x994   :  { %v1379_v2 = vadd.f32 %v3041_v40, %v1317_v28  ;;  %v1444_v12 = vadd.f32 %v3049_v26, %v1388_v49 }
 0x995   :  { %v1370_v60 = vpop.f32.mrf.mxu0  ;;  %v1435_v52 = vpop.f32.mrf.mxu1 }
 0x996   :  { %v4086_v37 = vmul.f32 %v4083_v55, %v1379_v2  ;;  %v4094_v39 = vmul.f32 %v4091_v58, %v1379_v2  ;;  %v4096_v15 = vadd.f32 %v1370_v60, %v1317_v28  ;;  %v4101_v59 = vmul.f32 %v3405_v48, %v1379_v2 }
 0x997   :  { %v3042_v3 = vpop.f32.mrf.mxu0  ;;  %v3050_v46 = vpop.f32.mrf.mxu1  ;;  %v1436_v29 = vadd.f32 %v1435_v52, %v1388_v49  ;;  %v4150_v62 = vmul.f32 %v3406_v14, %v1379_v2 }
 0x998   :  { %v1382_v42 = vadd.f32 %v3042_v3, %v1317_v28  ;;  %v1447_v32 = vadd.f32 %v3050_v46, %v1388_v49  ;;  %v1515_v44 = vmul.f32 %v4083_v55, %v4096_v15  ;;  %v4137_v10 = vmul.f32 %v3405_v48, %v4096_v15 }
 0x999   :  { %v1373_v61 = vpop.f32.mrf.mxu0  ;;  %v1438_v41 = vpop.f32.mrf.mxu1 }
 0x99a   :  { %v4104_v20 = vmul.f32 %v4083_v55, %v1382_v42  ;;  %v4107_v24 = vmul.f32 %v4091_v58, %v1382_v42  ;;  %v4109_v34 = vmul.f32 %v3405_v48, %v1382_v42  ;;  %v4111_v23 = vpack.c.bf16 %v1447_v32, %v1444_v12 }
 0x99b   :  { %v4113_v56 = vadd.f32 %v1373_v61, %v1317_v28  ;;  %v1439_v18 = vadd.f32 %v1438_v41, %v1388_v49  ;;  %v3057_v22 = vpop.f32.mrf.mxu0  ;;  %v4142_v7 = vmul.f32 %v3406_v14, %v1382_v42  ;;  %v4153_v28 = vmul.f32 %v3406_v14, %v4096_v15 }
 0x99c   :  { %v1548_v0 = vpack.c.bf16 %v4104_v20, %v4086_v37  ;;  %v1550_v30 = vpack.c.bf16 %v4107_v24, %v4094_v39  ;;  %v1552_v50 = vpack.c.bf16 %v4109_v34, %v4101_v59  ;;  %3191 = vmatprep.subr.msk.bf16.mxu1 %vm53_vm0, %v4111_v23  ;;  %v1509_v16 = vadd.f32 %v3057_v22, %v1453_v19  ;;  %v3407_v39 = vld [vmem:[%s4540_s12] sm:$0xff]  ;;  %v3408_v24 = vld [vmem:[%s4540_s12 + $0x10] sm:$0xff] }
 0x99d   :  { %v1516_v31 = vmul.f32 %v4083_v55, %v4113_v56  ;;  %v4126_v53 = vmul.f32 %v3405_v48, %v4113_v56  ;;  %v1500_v57 = vpop.f32.mrf.mxu0  ;;  %v4130_v1 = vpack.c.bf16 %v1439_v18, %v1436_v29  ;;  %v4134_v17 = vsel %vm53_vm0, %v4111_v23, 0 }
 0x99e   :  { %v4145_v35 = vmul.f32 %v3406_v14, %v4113_v56  ;;  %3060 = vmatpush3.bf16.xpose.msra.mxu1 %v4134_v17  ;;  %v1501_v33 = vadd.f32 %v1500_v57, %v1453_v19  ;;  %v1545_v60 = vmul.f32 %v3406_v14, %v1509_v16  ;;  %v1554_v46 = vpack.c.bf16 %v4142_v7, %v4150_v62  ;;  %v3413_v62 = vld [vmem:[%s4540_s12 + $0x28] sm:$0xff] }
 0x99f   :  { %v3058_v36 = vpop.f32.mrf.mxu0  ;;  %v1547_v4 = vpack.c.bf16 %v1516_v31, %v1515_v44  ;;  %3192 = vmatprep.subr.msk.bf16.mxu1 %vm53_vm0, %v4130_v1  ;;  %v1551_v26 = vpack.c.bf16 %v4126_v53, %v4137_v10  ;;  %v1582_v12 = vsel %vm53_vm0, %v4130_v1, 0  ;;  %v1537_v57 = vmul.f32 %v4091_v58, %v1509_v16 }
 0x9a0   :  { %v1512_v63 = vadd.f32 %v3058_v36, %v1453_v19  ;;  %v1553_v3 = vpack.c.bf16 %v4145_v35, %v4153_v28  ;;  %v1543_v42 = vmul.f32 %v3406_v14, %v1501_v33  ;;  %v1539_v29 = vmul.f32 %v3405_v48, %v1501_v33  ;;  %v3412_v35 = vld [vmem:[%s4540_s12 + $0x30] sm:$0xff] }
 0x9a1   :  { %3075 = vmatprep.mubr.msk.bf16.mxu1 %vm53_vm0, %v1547_v4  ;;  %v1503_v40 = vpop.f32.mrf.mxu0  ;;  %v1535_v4 = vmul.f32 %v4091_v58, %v1501_v33 }
 0x9a2   :  { %v1504_v49 = vadd.f32 %v1503_v40, %v1453_v19  ;;  %v1546_v52 = vmul.f32 %v3406_v14, %v1512_v63  ;;  %v1542_v41 = vmul.f32 %v3405_v48, %v1512_v63  ;;  %v1541_v19 = vmul.f32 %v3405_v48, %v1509_v16 }
 0x9a3   :  { %v1538_v31 = vmul.f32 %v4091_v58, %v1512_v63  ;;  %v1534_v40 = vmul.f32 %v4083_v55, %v1512_v63 }
 0x9a4   :  { %v1843_v2 = vpack.c.bf16 %v1546_v52, %v1545_v60  ;;  %v1544_v32 = vmul.f32 %v3406_v14, %v1504_v49  ;;  %v1841_v18 = vpack.c.bf16 %v1542_v41, %v1541_v19  ;;  %v1540_v22 = vmul.f32 %v3405_v48, %v1504_v49 }
 0x9a5   :  { %v1839_v14 = vpack.c.bf16 %v1538_v31, %v1537_v57  ;;  %v1536_v36 = vmul.f32 %v4091_v58, %v1504_v49  ;;  %v1533_v60 = vmul.f32 %v4083_v55, %v1509_v16  ;;  %v1519_v16 = vmul.f32 %v4091_v58, %v4096_v15 }
 0x9a6   :  { %3091 = vmatprep.subr.bf16.mxu0 %v1843_v2  ;;  %v1842_v61 = vpack.c.bf16 %v1544_v32, %v1543_v42  ;;  %3062 = vmatpush3.bf16.xpose.msra.mxu1 %v1582_v12  ;;  %v1840_v44 = vpack.c.bf16 %v1540_v22, %v1539_v29  ;;  %v1531_v42 = vmul.f32 %v4083_v55, %v1501_v33  ;;  %v3417_v29 = vld [vmem:[%s4540_s12 + $0x48] sm:$0xff] }
 0x9a7   :  { %3092 = vmatpush3.bf16.msra.mxu0 %v1843_v2  ;;  %3193 = vmatprep.subr.msk.bf16.mxu1 %vm53_vm0, %v4111_v23  ;;  %v1838_v48 = vpack.c.bf16 %v1536_v36, %v1535_v4  ;;  %v1837_v52 = vpack.c.bf16 %v1534_v40, %v1533_v60  ;;  %v1532_v2 = vmul.f32 %v4083_v55, %v1504_v49  ;;  %v3419_v4 = vld [vmem:[%s4540_s12 + $0x60] sm:$0xff] }
 0x9a8   :  { %3093 = vmatprep.subr.bf16.mxu0 %v1842_v61  ;;  %v1520_v55 = vmul.f32 %v4091_v58, %v4113_v56 }
 0x9a9   :  { %v1836_v32 = vpack.c.bf16 %v1532_v2, %v1531_v42  ;;  %v3421_v42 = vld [vmem:[%s4540_s12 + $0x68] sm:$0xff] }
 0x9aa   :  { %v1549_v33 = vpack.c.bf16 %v1520_v55, %v1519_v16  ;;  %v3422_v55 = vld [vmem:[%s4540_s12 + $0x78] sm:$0xff] }
 0x9ab   :  { %3094 = vmatpush3.bf16.msra.mxu0 %v1842_v61 }
 0x9ac   :  { %3095 = vmatprep.subr.bf16.mxu0 %v1841_v18 }
 0x9ae   :  { %3064 = vmatpush3.bf16.xpose.msra.mxu1 %v4134_v17 }
 0x9af   :  { %3096 = vmatpush3.bf16.msra.mxu0 %v1841_v18  ;;  %3194 = vmatprep.subr.msk.bf16.mxu1 %vm53_vm0, %v4130_v1  ;;  %v3416_v18 = vld [vmem:[%s4540_s12 + $0x50] sm:$0xff] }
 0x9b0   :  { %3097 = vmatprep.subr.bf16.mxu0 %v1840_v44 }
 0x9b3   :  { %3098 = vmatpush3.bf16.msra.mxu0 %v1840_v44 }
 0x9b4   :  { %3099 = vmatprep.subr.bf16.mxu0 %v1839_v14 }
 0x9b6   :  { %3066 = vmatpush3.bf16.xpose.msra.mxu1 %v1582_v12 }
 0x9b7   :  { %3100 = vmatpush3.bf16.msra.mxu0 %v1839_v14  ;;  %3195 = vmatprep.subr.msk.bf16.mxu1 %vm53_vm0, %v4111_v23  ;;  %v3418_v14 = vld [vmem:[%s4540_s12 + $0x58] sm:$0xff] }
 0x9b8   :  { %3101 = vmatprep.subr.bf16.mxu0 %v1838_v48 }
 0x9bb   :  { %3102 = vmatpush3.bf16.msra.mxu0 %v1838_v48 }
 0x9bc   :  { %3103 = vmatprep.subr.bf16.mxu0 %v1837_v52 }
 0x9be   :  { %3068 = vmatpush3.bf16.xpose.msra.mxu1 %v4134_v17 }
 0x9bf   :  { %3104 = vmatpush3.bf16.msra.mxu0 %v1837_v52  ;;  %3196 = vmatprep.subr.msk.bf16.mxu1 %vm53_vm0, %v4130_v1  ;;  %v3420_v52 = vld [vmem:[%s4540_s12 + $0x70] sm:$0xff] }
 0x9c0   :  { %3105 = vmatprep.subr.bf16.mxu0 %v1836_v32 }
 0x9c3   :  { %3106 = vmatpush3.bf16.msra.mxu0 %v1836_v32 }
 0x9c6   :  { %3070 = vmatpush3.bf16.xpose.msra.mxu1 %v1582_v12 }
 0x9c7   :  { %3197 = vmatprep.subr.msk.bf16.mxu1 %vm53_vm0, %v4111_v23  ;;  %v3409_v23 = vld [vmem:[%s4540_s12 + $0x8] sm:$0xff] }
 0x9ce   :  { %3072 = vmatpush3.bf16.xpose.msra.mxu1 %v4134_v17 }
 0x9cf   :  { %3198 = vmatprep.subr.msk.bf16.mxu1 %vm53_vm0, %v4130_v1  ;;  %v3411_v1 = vld [vmem:[%s4540_s12 + $0x20] sm:$0xff] }
 0x9d6   :  { %3074 = vmatpush3.bf16.xpose.msra.mxu1 %v1582_v12  ;;  %v3415_v12 = vld [vmem:[%s4540_s12 + $0x40] sm:$0xff] }
 0x9d7   :  { %3151 = vmatprep.subr.bf16.mxu1 %v3447_v8 }
 0x9dd   :  { %3076 = vmatmul.mubr.msk.bf16.vlgmr.msra.gmra.mxu1 %vm53_vm0, %v1548_v0 }
 0x9de   :  { %3079 = vmatprep.mubr.msk.bf16.mxu1 %vm53_vm0, %v1549_v33 }
 0x9e5   :  { %3080 = vmatmul.mubr.msk.bf16.gmra.mxu1 %vm53_vm0, %v1550_v30 }
 0x9e6   :  { %3083 = vmatprep.mubr.msk.bf16.mxu1 %vm53_vm0, %v1551_v26 }
 0x9ed   :  { %3084 = vmatmul.mubr.msk.bf16.gmra.mxu1 %vm53_vm0, %v1552_v50  ;;  %v3410_v50 = vld [vmem:[%s4540_s12 + $0x18] sm:$0xff] }
 0x9ee   :  { %3087 = vmatprep.mubr.msk.bf16.mxu1 %vm53_vm0, %v1553_v3  ;;  %v3414_v3 = vld [vmem:[%s4540_s12 + $0x38] sm:$0xff] }
 0x9f5   :  { %3088 = vmatmul.mubr.msk.bf16.gmra.mxu1 %vm53_vm0, %v1554_v46 }
 0x9f6   :  { %3155 = vmatprep.mubr.msk.bf16.mxu1 %vm3448_vm1, %v3447_v8 }
 0xa9d   :  { %v3077_v37 = vpop.f32.mrf.mxu1 }
 0xa9e   :  { %v4228_v34 = vadd.f32 %v3408_v24, %v3077_v37 }
 0xa9f   :  { %v1621_v58 = vpop.f32.mrf.mxu1 }
 0xaa0   :  { %v4222_v15 = vadd.f32 %v3407_v39, %v1621_v58 }
 0xaa1   :  { %v3078_v59 = vpop.f32.mrf.mxu1 }
 0xaa2   :  { %1684 = vmax.xlane.f32.xlu1 %v4222_v15  ;;  %v4237_v53 = vadd.f32 %v3410_v50, %v3078_v59 }
 0xaa3   :  { %v1624_v20 = vpop.f32.mrf.mxu1 }
 0xaa4   :  { %v1625_v56 = vadd.f32 %v3409_v23, %v1624_v20 }
 0xaa5   :  { %v3081_v0 = vpop.f32.mrf.mxu1 }
 0xaa6   :  { %1686 = vmax.xlane.f32.xlu0 %v1625_v56  ;;  %1688 = vmax.xlane.f32.xlu1 %v4228_v34  ;;  %v4249_v63 = vadd.f32 %v3412_v35, %v3081_v0 }
 0xaa7   :  { %v1637_v30 = vpop.f32.mrf.mxu1 }
 0xaa8   :  { %v4242_v17 = vadd.f32 %v3411_v1, %v1637_v30 }
 0xaa9   :  { %v3082_v10 = vpop.f32.mrf.mxu1 }
 0xaaa   :  { %1690 = vmax.xlane.f32.xlu0 %v4237_v53  ;;  %1692 = vmax.xlane.f32.xlu1 %v4242_v17  ;;  %v4258_v46 = vadd.f32 %v3414_v3, %v3082_v10 }
 0xaab   :  { %v1640_v7 = vpop.f32.mrf.mxu1 }
 0xaac   :  { %v1641_v28 = vadd.f32 %v3413_v62, %v1640_v7 }
 0xaad   :  { %v3085_v26 = vpop.f32.mrf.mxu1 }
 0xaae   :  { %1694 = vmax.xlane.f32.xlu0 %v1641_v28  ;;  %1696 = vmax.xlane.f32.xlu1 %v4249_v63  ;;  %v4270_v22 = vadd.f32 %v3416_v18, %v3085_v26 }
 0xaaf   :  { %v1653_v49 = vpop.f32.mrf.mxu1 }
 0xab0   :  { %v4263_v61 = vadd.f32 %v3415_v12, %v1653_v49 }
 0xab1   :  { %v3086_v41 = vpop.f32.mrf.mxu1 }
 0xab2   :  { %1698 = vmax.xlane.f32.xlu0 %v4258_v46  ;;  %1700 = vmax.xlane.f32.xlu1 %v4263_v61  ;;  %v4282_v36 = vadd.f32 %v3418_v14, %v3086_v41 }
 0xab3   :  { %v1656_v19 = vpop.f32.mrf.mxu1 }
 0xab4   :  { %v4275_v44 = vadd.f32 %v3417_v29, %v1656_v19 }
 0xab5   :  { %v3089_v31 = vpop.f32.mrf.mxu1 }
 0xab6   :  { %1702 = vmax.xlane.f32.xlu0 %v4275_v44  ;;  %1704 = vmax.xlane.f32.xlu1 %v4270_v22  ;;  %v4294_v2 = vadd.f32 %v3420_v52, %v3089_v31 }
 0xab7   :  { %v1669_v57 = vpop.f32.mrf.mxu1 }
 0xab8   :  { %v4287_v48 = vadd.f32 %v3419_v4, %v1669_v57 }
 0xab9   :  { %v3090_v40 = vpop.f32.mrf.mxu1 }
 0xaba   :  { %1706 = vmax.xlane.f32.xlu0 %v4282_v36  ;;  %1708 = vmax.xlane.f32.xlu1 %v4287_v48  ;;  %v4306_v16 = vadd.f32 %v3422_v55, %v3090_v40 }
 0xabb   :  { %v1672_v60 = vpop.f32.mrf.mxu1 }
 0xabc   :  { %v4299_v32 = vadd.f32 %v3421_v42, %v1672_v60 }
 0xabe   :  { %1710 = vmax.xlane.f32.xlu0 %v4299_v32  ;;  %1712 = vmax.xlane.f32.xlu1 %v4294_v2 }
 0xac2   :  { %1714 = vmax.xlane.f32.xlu0 %v4306_v16 }
 0xb2b   :  { %v1685_v33 = vpop.xlane.xlu1 %1684 }
 0xb2c   :  { %v1716_v37 = vsub.f32 %v4222_v15, %v1685_v33 }
 0xb2e   :  { %v1732_v58 = vmul.f32 1.442695, %v1716_v37 }
 0xb2f   :  { %v1687_v39 = vpop.xlane.xlu0 %1686  ;;  %v1689_v59 = vpop.xlane.xlu1 %1688 }
 0xb30   :  { %3326 = vpow2.f32 %v1732_v58  ;;  %v1717_v20 = vsub.f32 %v1625_v56, %v1687_v39  ;;  %v1718_v24 = vsub.f32 %v4228_v34, %v1689_v59 }
 0xb32   :  { %v1734_v23 = vmul.f32 1.442695, %v1717_v20  ;;  %v1736_v0 = vmul.f32 1.442695, %v1718_v24 }
 0xb33   :  { %v1691_v30 = vpop.xlane.xlu0 %1690  ;;  %v1693_v50 = vpop.xlane.xlu1 %1692 }
 0xb34   :  { %3328 = vpow2.f32 %v1734_v23  ;;  %v1719_v1 = vsub.f32 %v4237_v53, %v1691_v30  ;;  %v1720_v10 = vsub.f32 %v4242_v17, %v1693_v50 }
 0xb35   :  { %3330 = vpow2.f32 %v1736_v0 }
 0xb36   :  { %v1738_v7 = vmul.f32 1.442695, %v1719_v1  ;;  %v1740_v35 = vmul.f32 1.442695, %v1720_v10 }
 0xb37   :  { %v1695_v15 = vpop.xlane.xlu0 %1694  ;;  %v1697_v62 = vpop.xlane.xlu1 %1696 }
 0xb38   :  { %3332 = vpow2.f32 %v1738_v7  ;;  %v1721_v26 = vsub.f32 %v1641_v28, %v1695_v15  ;;  %v1722_v56 = vsub.f32 %v4249_v63, %v1697_v62  ;;  %v2617_v15 = vld [vmem:[%s4531_s3] sm:$0xff] }
 0xb39   :  { %3334 = vpow2.f32 %v1740_v35 }
 0xb3a   :  { %v1742_v34 = vmul.f32 1.442695, %v1721_v26  ;;  %v1744_v49 = vmul.f32 1.442695, %v1722_v56 }
 0xb3b   :  { %v1699_v3 = vpop.xlane.xlu0 %1698  ;;  %v1701_v12 = vpop.xlane.xlu1 %1700 }
 0xb3c   :  { %3336 = vpow2.f32 %v1742_v34  ;;  %v1723_v41 = vsub.f32 %v4258_v46, %v1699_v3  ;;  %v1724_v53 = vsub.f32 %v4263_v61, %v1701_v12 }
 0xb3d   :  { %v4316_v17 = vpop.eup %3326  ;;  %3338 = vpow2.f32 %v1744_v49 }
 0xb3e   :  { %v1746_v19 = vmul.f32 1.442695, %v1723_v41  ;;  %v1748_v18 = vmul.f32 1.442695, %v1724_v53  ;;  %1764 = vadd.xlane.f32.xlu1 %v4316_v17 }
 0xb3f   :  { %v1703_v28 = vpop.xlane.xlu0 %1702  ;;  %v1705_v29 = vpop.xlane.xlu1 %1704 }
 0xb40   :  { %3340 = vpow2.f32 %v1746_v19  ;;  %v1725_v63 = vsub.f32 %v4275_v44, %v1703_v28  ;;  %v1726_v31 = vsub.f32 %v4270_v22, %v1705_v29 }
 0xb41   :  { %v4321_v57 = vpop.eup %3328  ;;  %3342 = vpow2.f32 %v1748_v18 }
 0xb42   :  { %v4323_v46 = vpop.eup %3330  ;;  %v1750_v61 = vmul.f32 1.442695, %v1725_v63  ;;  %v1752_v14 = vmul.f32 1.442695, %v1726_v31  ;;  %1766 = vadd.xlane.f32.xlu0 %v4321_v57 }
 0xb43   :  { %1768 = vadd.xlane.f32.xlu1 %v4323_v46  ;;  %v1707_v4 = vpop.xlane.xlu0 %1706  ;;  %v1709_v40 = vpop.xlane.xlu1 %1708 }
 0xb44   :  { %3344 = vpow2.f32 %v1750_v61  ;;  %v1727_v60 = vsub.f32 %v4282_v36, %v1707_v4  ;;  %v1728_v44 = vsub.f32 %v4287_v48, %v1709_v40 }
 0xb45   :  { %v4329_v52 = vpop.eup %3332  ;;  %3346 = vpow2.f32 %v1752_v14 }
 0xb46   :  { %v4331_v22 = vpop.eup %3334  ;;  %v1754_v42 = vmul.f32 1.442695, %v1727_v60  ;;  %v1756_v55 = vmul.f32 1.442695, %v1728_v44  ;;  %1770 = vadd.xlane.f32.xlu0 %v4329_v52 }
 0xb47   :  { %1772 = vadd.xlane.f32.xlu1 %v4331_v22  ;;  %v1711_v33 = vpop.xlane.xlu0 %1710  ;;  %v1713_v37 = vpop.xlane.xlu1 %1712 }
 0xb48   :  { %3348 = vpow2.f32 %v1754_v42  ;;  %v1729_v58 = vsub.f32 %v4299_v32, %v1711_v33  ;;  %v1730_v36 = vsub.f32 %v4294_v2, %v1713_v37 }
 0xb49   :  { %v4337_v39 = vpop.eup %3336  ;;  %3350 = vpow2.f32 %v1756_v55 }
 0xb4a   :  { %v4339_v48 = vpop.eup %3338  ;;  %v1758_v59 = vmul.f32 1.442695, %v1729_v58  ;;  %v1760_v20 = vmul.f32 1.442695, %v1730_v36  ;;  %1774 = vadd.xlane.f32.xlu0 %v4337_v39 }
 0xb4b   :  { %1776 = vadd.xlane.f32.xlu1 %v4339_v48  ;;  %v1715_v24 = vpop.xlane.xlu0 %1714 }
 0xb4c   :  { %3352 = vpow2.f32 %v1758_v59  ;;  %v1731_v23 = vsub.f32 %v4306_v16, %v1715_v24 }
 0xb4d   :  { %v4344_v0 = vpop.eup %3340  ;;  %3354 = vpow2.f32 %v1760_v20 }
 0xb4e   :  { %v4346_v32 = vpop.eup %3342  ;;  %v1762_v2 = vmul.f32 1.442695, %v1731_v23  ;;  %1778 = vadd.xlane.f32.xlu0 %v4344_v0 }
 0xb4f   :  { %1780 = vadd.xlane.f32.xlu1 %v4346_v32 }
 0xb50   :  { %3356 = vpow2.f32 %v1762_v2 }
 0xb51   :  { %v4350_v30 = vpop.eup %3344 }
 0xb52   :  { %v4352_v50 = vpop.eup %3346  ;;  %1782 = vadd.xlane.f32.xlu0 %v4350_v30 }
 0xb53   :  { %1784 = vadd.xlane.f32.xlu1 %v4352_v50 }
 0xb55   :  { %v4356_v16 = vpop.eup %3348 }
 0xb56   :  { %v4358_v1 = vpop.eup %3350  ;;  %1786 = vadd.xlane.f32.xlu0 %v4356_v16 }
 0xb57   :  { %1788 = vadd.xlane.f32.xlu1 %v4358_v1 }
 0xb59   :  { %v4362_v10 = vpop.eup %3352 }
 0xb5a   :  { %v4364_v7 = vpop.eup %3354  ;;  %1790 = vadd.xlane.f32.xlu0 %v4362_v10 }
 0xb5b   :  { %1792 = vadd.xlane.f32.xlu1 %v4364_v7 }
 0xb5d   :  { %v4368_v35 = vpop.eup %3356 }
 0xb5e   :  { %1794 = vadd.xlane.f32.xlu0 %v4368_v35 }
 0xb6c   :  { %2620 = vperm.xlu1 %3206, %v2617_v15  }
 0xbc7   :  { %v1765_v62 = vpop.xlane.xlu1 %1764 }
 0xbc8   :  { %3358 = vrcp.f32 %v1765_v62 }
 0xbcb   :  { %v1767_v26 = vpop.xlane.xlu0 %1766 }
 0xbcc   :  { %3360 = vrcp.f32 %v1767_v26  ;;  %v1769_v56 = vpop.xlane.xlu1 %1768 }
 0xbcd   :  { %3362 = vrcp.f32 %v1769_v56 }
 0xbcf   :  { %v1771_v34 = vpop.xlane.xlu0 %1770 }
 0xbd0   :  { %3364 = vrcp.f32 %v1771_v34  ;;  %v1773_v49 = vpop.xlane.xlu1 %1772 }
 0xbd1   :  { %3366 = vrcp.f32 %v1773_v49 }
 0xbd3   :  { %v1775_v3 = vpop.xlane.xlu0 %1774 }
 0xbd4   :  { %3368 = vrcp.f32 %v1775_v3  ;;  %v1777_v12 = vpop.xlane.xlu1 %1776 }
 0xbd5   :  { %3370 = vrcp.f32 %v1777_v12  ;;  %v3359_v41 = vpop.eup %3358 }
 0xbd6   :  { %v1812_v28 = vmul.f32 %v3359_v41, %v4316_v17 }
 0xbd7   :  { %v1779_v53 = vpop.xlane.xlu0 %1778 }
 0xbd8   :  { %3372 = vrcp.f32 %v1779_v53  ;;  %v1781_v19 = vpop.xlane.xlu1 %1780 }
 0xbd9   :  { %v3361_v18 = vpop.eup %3360  ;;  %3374 = vrcp.f32 %v1781_v19 }
 0xbda   :  { %v1813_v29 = vmul.f32 %v3361_v18, %v4321_v57  ;;  %v3363_v63 = vpop.eup %3362 }
 0xbdb   :  { %v1783_v31 = vpop.xlane.xlu0 %1782  ;;  %v1814_v40 = vmul.f32 %v3363_v63, %v4323_v46 }
 0xbdc   :  { %3376 = vrcp.f32 %v1783_v31  ;;  %v1785_v61 = vpop.xlane.xlu1 %1784  ;;  %v1828_v14 = vpack.c.bf16 %v1813_v29, %v1812_v28 }
 0xbdd   :  { %v3365_v4 = vpop.eup %3364  ;;  %3378 = vrcp.f32 %v1785_v61 }
 0xbde   :  { %3107 = vmatprep.mubr.bf16.mxu0 %v1828_v14  ;;  %v1815_v60 = vmul.f32 %v3365_v4, %v4329_v52  ;;  %v3367_v44 = vpop.eup %3366 }
 0xbdf   :  { %v1787_v42 = vpop.xlane.xlu0 %1786  ;;  %v1816_v57 = vmul.f32 %v3367_v44, %v4331_v22 }
 0xbe0   :  { %3380 = vrcp.f32 %v1787_v42  ;;  %v1789_v55 = vpop.xlane.xlu1 %1788  ;;  %v1829_v33 = vpack.c.bf16 %v1815_v60, %v1814_v40 }
 0xbe1   :  { %v3369_v17 = vpop.eup %3368  ;;  %3382 = vrcp.f32 %v1789_v55 }
 0xbe2   :  { %3108 = vmatmul.mubr.bf16.vlgmr.msra.gmra.mxu0 %v1829_v33  ;;  %v1817_v37 = vmul.f32 %v3369_v17, %v4337_v39  ;;  %v3371_v58 = vpop.eup %3370 }
 0xbe3   :  { %v1791_v36 = vpop.xlane.xlu0 %1790  ;;  %v1818_v52 = vmul.f32 %v3371_v58, %v4339_v48 }
 0xbe4   :  { %3384 = vrcp.f32 %v1791_v36  ;;  %v1793_v59 = vpop.xlane.xlu1 %1792  ;;  %v1830_v20 = vpack.c.bf16 %v1817_v37, %v1816_v57 }
 0xbe5   :  { %v3373_v46 = vpop.eup %3372  ;;  %3386 = vrcp.f32 %v1793_v59 }
 0xbe6   :  { %3111 = vmatprep.mubr.bf16.mxu0 %v1830_v20  ;;  %v1819_v24 = vmul.f32 %v3373_v46, %v4344_v0  ;;  %v3375_v23 = vpop.eup %3374 }
 0xbe7   :  { %v1795_v2 = vpop.xlane.xlu0 %1794  ;;  %v1820_v22 = vmul.f32 %v3375_v23, %v4346_v32 }
 0xbe8   :  { %3388 = vrcp.f32 %v1795_v2  ;;  %v1831_v15 = vpack.c.bf16 %v1819_v24, %v1818_v52 }
 0xbe9   :  { %v3377_v62 = vpop.eup %3376 }
 0xbea   :  { %3112 = vmatmul.mubr.bf16.gmra.mxu0 %v1831_v15  ;;  %v1821_v39 = vmul.f32 %v3377_v62, %v4350_v30  ;;  %v3379_v26 = vpop.eup %3378 }
 0xbeb   :  { %v1822_v49 = vmul.f32 %v3379_v26, %v4352_v50  ;;  %v3230_v50 = vld [vmem:[%s4534_s6 + $0x78] sm:$0xff]   ;;  %v3233_v26 = vld [vmem:[%s4536_s8 + $0x10] sm:$0xff]  }
 0xbec   :  { %v1832_v56 = vpack.c.bf16 %v1821_v39, %v1820_v22  ;;  %3123 = vmatprep.subr.bf16.mxu0 %v3230_v50  ;;  %v3232_v39 = vld [vmem:[%s4536_s8 + $0x18] sm:$0xff]  }
 0xbed   :  { %v3381_v34 = vpop.eup %3380  ;;  %3124 = vmatpush3.bf16.msra.mxu0 %v3230_v50 }
 0xbee   :  { %3115 = vmatprep.mubr.bf16.mxu0 %v1832_v56  ;;  %v1823_v48 = vmul.f32 %v3381_v34, %v4356_v16  ;;  %v3383_v3 = vpop.eup %3382  ;;  %v3231_v16 = vld [vmem:[%s4534_s6 + $0x70] sm:$0xff]   ;;  %v1958_v56 = vrot.slane %v4069_v51, %v882_v13 }
 0xbef   :  { %v1824_v41 = vmul.f32 %v3383_v3, %v4358_v1  ;;  %3125 = vmatprep.subr.bf16.mxu0 %v3231_v16 }
 0xbf0   :  { %v1833_v0 = vpack.c.bf16 %v1823_v48, %v1822_v49 }
 0xbf1   :  { %v3385_v12 = vpop.eup %3384  ;;  %3126 = vmatpush3.bf16.msra.mxu0 %v3231_v16 }
 0xbf2   :  { %3116 = vmatmul.mubr.bf16.gmra.mxu0 %v1833_v0  ;;  %v1825_v53 = vmul.f32 %v3385_v12, %v4362_v10  ;;  %v3387_v19 = vpop.eup %3386  ;;  %3131 = vmatprep.subr.bf16.mxu0 %v3232_v39 }
 0xbf3   :  { %v1826_v30 = vmul.f32 %v3387_v19, %v4364_v7 }
 0xbf4   :  { %v1834_v32 = vpack.c.bf16 %v1825_v53, %v1824_v41 }
 0xbf5   :  { %v3389_v18 = vpop.eup %3388 }
 0xbf6   :  { %3119 = vmatprep.mubr.bf16.mxu0 %v1834_v32  ;;  %v1827_v28 = vmul.f32 %v3389_v18, %v4368_v35 }
 0xbf8   :  { %v1835_v29 = vpack.c.bf16 %v1827_v28, %v1826_v30 }
 0xbfa   :  { %3120 = vmatmul.mubr.bf16.gmra.mxu0 %v1835_v29 }
 0xca2   :  { %v3109_v1 = vpop.f32.mrf.mxu0 }
 0xca4   :  { %v1878_v10 = vpop.f32.mrf.mxu0 }
 0xca6   :  { %v3110_v63 = vpop.f32.mrf.mxu0 }
 0xca8   :  { %v1881_v7 = vpop.f32.mrf.mxu0 }
 0xcaa   :  { %v3113_v31 = vpop.f32.mrf.mxu0 }
 0xcab   :  { %v1943_v37 = vadd.f32 %v3113_v31, %v3109_v1 }
 0xcac   :  { %v1894_v35 = vpop.f32.mrf.mxu0 }
 0xcad   :  { %v1941_v17 = vadd.f32 %v1894_v35, %v1878_v10 }
 0xcae   :  { %v3114_v61 = vpop.f32.mrf.mxu0 }
 0xcaf   :  { %v1944_v55 = vadd.f32 %v3114_v61, %v3110_v63 }
 0xcb0   :  { %v1897_v14 = vpop.f32.mrf.mxu0 }
 0xcb1   :  { %v1942_v57 = vadd.f32 %v1897_v14, %v1881_v7 }
 0xcb2   :  { %v3117_v4 = vpop.f32.mrf.mxu0 }
 0xcb3   :  { %v1947_v46 = vadd.f32 %v3117_v4, %v1943_v37 }
 0xcb4   :  { %v1910_v40 = vpop.f32.mrf.mxu0 }
 0xcb5   :  { %v1945_v59 = vadd.f32 %v1941_v17, %v1910_v40 }
 0xcb6   :  { %v3118_v60 = vpop.f32.mrf.mxu0 }
 0xcb7   :  { %v1948_v58 = vadd.f32 %v3118_v60, %v1944_v55 }
 0xcb8   :  { %v1913_v44 = vpop.f32.mrf.mxu0 }
 0xcb9   :  { %v1946_v20 = vadd.f32 %v1942_v57, %v1913_v44 }
 0xcba   :  { %v3121_v42 = vpop.f32.mrf.mxu0 }
 0xcbb   :  { %v1951_v15 = vadd.f32 %v3121_v42, %v1947_v46 }
 0xcbc   :  { %v1926_v33 = vpop.f32.mrf.mxu0 }
 0xcbd   :  { %v1949_v23 = vadd.f32 %v1945_v59, %v1926_v33 }
 0xcbe   :  { %v3122_v36 = vpop.f32.mrf.mxu0 }
 0xcbf   :  { %v1952_v52 = vadd.f32 %v3122_v36, %v1948_v58 }
 0xcc0   :  { %v1929_v24 = vpop.f32.mrf.mxu0 }
 0xcc1   :  { %v1950_v2 = vadd.f32 %v1946_v20, %v1929_v24  ;;  %v1954_v22 = vpack.c.bf16 %v1952_v52, %v1951_v15 }
 0xcc3   :  { %v1953_v62 = vpack.c.bf16 %v1950_v2, %v1949_v23  ;;  %v2077_v2 = vrot.slane %v4069_v51, %v1001_v38 }
 0xcc5   :  { %3127 = vmatprep.mubr.msk.bf16.mxu0 %vm53_vm0, %v1953_v62 }
 0xcc6   :  { %3128 = vmatmul.mubr.msk.bf16.vlgmr.msra.gmra.mxu0 %vm53_vm0, %v1954_v22 }
 0xcc7   :  { %3132 = vmatpush3.bf16.msra.mxu0 %v3232_v39 }
 0xcc8   :  { %3133 = vmatprep.subr.bf16.mxu0 %v3233_v26 }
 0xccb   :  { %3134 = vmatpush3.bf16.msra.mxu0 %v3233_v26 }
 0xd86   :  { %v3129_v34 = vpop.f32.mrf.mxu0 }
 0xd87   :  { %v2020_v3 = vadd.f32 %v3129_v34, %v1958_v56 }
 0xd88   :  { %v2011_v49 = vpop.f32.mrf.mxu0 }
 0xd89   :  { %v2012_v48 = vadd.f32 %v2011_v49, %v1958_v56  ;;  %v2028_v19 = vadd.f32 %v2020_v3, %v4048_v9 }
 0xd8a   :  { %v3130_v0 = vpop.f32.mrf.mxu0 }
 0xd8b   :  { %v2026_v12 = vadd.f32 %v2012_v48, %v4044_v45  ;;  %v2023_v41 = vadd.f32 %v3130_v0, %v1958_v56  ;;  %v2046_v29 = vmul.f32 %v2028_v19, %v2028_v19  ;;  %v2033_v10 = vsel %vm53_vm0, %v2028_v19, 0.0 }
 0xd8c   :  { %v2014_v53 = vpop.f32.mrf.mxu0 }
 0xd8d   :  { %v2015_v32 = vadd.f32 %v2014_v53, %v1958_v56  ;;  %v2044_v18 = vmul.f32 %v2026_v12, %v2026_v12  ;;  %v2029_v30 = vadd.f32 %v2023_v41, %v4050_v25  ;;  %v2030_v13 = vsel %vm53_vm0, %v2026_v12, 0.0 }
 0xd8e   :  { %v2051_v25 = vsel %vm53_vm0, %v2046_v29, 0.0  ;;  %v2085_v56 = vrot.slane %v4069_v51, %v1009_v47  ;;  %v3234_v51 = vld [vmem:[%s4538_s10 + $0x38] sm:$0xff]   ;;  %v3236_v29 = vld [vmem:[%s4538_s10 + $0x28] sm:$0xff]  }
 0xd8f   :  { %v2027_v28 = vadd.f32 %v2015_v32, %v4046_v6  ;;  %v2048_v45 = vsel %vm53_vm0, %v2044_v18, 0.0  ;;  %v2047_v63 = vmul.f32 %v2029_v30, %v2029_v30  ;;  %v2035_v6 = vsel %vm53_vm0, %v2029_v30, 0.0  ;;  %3139 = vmatprep.subr.bf16.mxu0 %v3234_v51 }
 0xd91   :  { %v2031_v50 = vsel %vm53_vm0, %v2027_v28, 0.0  ;;  %v2045_v16 = vmul.f32 %v2027_v28, %v2027_v28  ;;  %v2053_v14 = vsel %vm53_vm0, %v2047_v63, 0.0 }
 0xd92   :  { %v2032_v1 = vadd.f32 %v2031_v50, %v2030_v13  ;;  %v3237_v13 = vld [vmem:[%s4538_s10 + $0x20] sm:$0xff]  }
 0xd93   :  { %v2049_v9 = vsel %vm53_vm0, %v2045_v16, 0.0  ;;  %v2747_v50 = vld [vmem:[%s4537_s9 + $0x1] ss:$0 sm:$0xff] }
 0xd94   :  { %v2034_v7 = vadd.f32 %v2033_v10, %v2032_v1  ;;  %v2050_v31 = vadd.f32 %v2049_v9, %v2048_v45 }
 0xd96   :  { %v2036_v35 = vadd.f32 %v2035_v6, %v2034_v7  ;;  %v2052_v61 = vadd.f32 %v2051_v25, %v2050_v31 }
 0xd98   :  { %v2037_v4 = vrot.slane %v2036_v35, 4  ;;  %v2054_v40 = vadd.f32 %v2053_v14, %v2052_v61 }
 0xd9a   :  { %v2038_v60 = vadd.f32 %v2037_v4, %v2036_v35  ;;  %v2055_v44 = vrot.slane %v2054_v40, 4 }
 0xd9c   :  { %v2039_v42 = vrot.slane %v2038_v60, 2  ;;  %v2056_v55 = vadd.f32 %v2055_v44, %v2054_v40 }
 0xd9e   :  { %v2040_v33 = vadd.f32 %v2039_v42, %v2038_v60  ;;  %v2057_v17 = vrot.slane %v2056_v55, 2 }
 0xda0   :  { %v2041_v57 = vrot.slane %v2040_v33, 1  ;;  %v2058_v37 = vadd.f32 %v2057_v17, %v2056_v55 }
 0xda2   :  { %v2042_v58 = vadd.f32 %v2041_v57, %v2040_v33  ;;  %v2059_v36 = vrot.slane %v2058_v37, 1 }
 0xda4   :  { %v2043_v59 = vmul.f32 0.03125, %v2042_v58  ;;  %v2060_v20 = vadd.f32 %v2059_v36, %v2058_v37 }
 0xda6   :  { %v2061_v46 = vmul.f32 0.03125, %v2060_v20  ;;  %v2062_v52 = vmul.f32 %v2043_v59, %v2043_v59  ;;  %v2065_v15 = vsub.f32 %v2027_v28, %v2043_v59  ;;  %v2064_v62 = vsub.f32 %v2026_v12, %v2043_v59  ;;  %v3235_v28 = vld [vmem:[%s4538_s10 + $0x30] sm:$0xff]  }
 0xda7   :  { %v2066_v22 = vsub.f32 %v2028_v19, %v2043_v59  ;;  %v2067_v39 = vsub.f32 %v2029_v30, %v2043_v59 }
 0xda8   :  { %v2063_v24 = vsub.f32 %v2061_v46, %v2062_v52 }
 0xdaa   :  { %v2068_v23 = vadd.f32 1e-05, %v2063_v24 }
 0xdac   :  { %3390 = vrsqrt.f32 %v2068_v23 }
 0xdb9   :  { %v3391_v26 = vpop.eup %3390 }
 0xdba   :  { %v2071_v34 = vmul.f32 %v3391_v26, %v2065_v15  ;;  %v2070_v49 = vmul.f32 %v3391_v26, %v2064_v62  ;;  %v2072_v48 = vmul.f32 %v3391_v26, %v2066_v22  ;;  %v2073_v3 = vmul.f32 %v3391_v26, %v2067_v39 }
 0xdbc   :  { %v2079_v0 = vmul.f32 %v2077_v2, %v2071_v34  ;;  %v2078_v41 = vmul.f32 %v2077_v2, %v2070_v49  ;;  %v2080_v53 = vmul.f32 %v2077_v2, %v2072_v48  ;;  %v2081_v32 = vmul.f32 %v2077_v2, %v2073_v3 }
 0xdbe   :  { %v4425_v18 = vadd.f32 %v2085_v56, %v2078_v41  ;;  %v4427_v38 = vadd.f32 %v2085_v56, %v2079_v0  ;;  %v4429_v12 = vadd.f32 %v2085_v56, %v2080_v53  ;;  %v4431_v19 = vadd.f32 %v2085_v56, %v2081_v32 }
 0xdc0   :  { %v2090_v30 = vpack.c.bf16 %v4427_v38, %v4425_v18  ;;  %v2091_v47 = vpack.c.bf16 %v4431_v19, %v4429_v12 }
 0xdc2   :  { %3135 = vmatprep.mubr.msk.bf16.mxu0 %vm53_vm0, %v2090_v30  ;;  %v3238_v30 = vld [vmem:[%s4541_s13 + $0x18] sm:$0xff]  }
 0xdc3   :  { %3136 = vmatmul.mubr.msk.bf16.vlgmr.msra.gmra.mxu0 %vm53_vm0, %v2091_v47  ;;  %v3240_v47 = vld [vmem:[%s4541_s13 + $0x8] sm:$0xff]   ;;  %3152 = vmatpush3.bf16.msra.mxu1 %v3238_v30 }
 0xdc4   :  { %3140 = vmatpush3.bf16.msra.mxu0 %v3234_v51  ;;  %3153 = vmatprep.subr.bf16.mxu1 %v3447_v8  ;;  %v3239_v51 = vld [vmem:[%s4541_s13 + $0x10] sm:$0xff]  }
 0xdc5   :  { %3141 = vmatprep.subr.bf16.mxu0 %v3235_v28 }
 0xdc7   :  { %3154 = vmatpush3.bf16.msra.mxu1 %v3239_v51 }
 0xdc8   :  { %3142 = vmatpush3.bf16.msra.mxu0 %v3235_v28  ;;  %v3241_v28 = vld [vmem:[%s4541_s13] sm:$0xff]   ;;  %3167 = vmatprep.subr.bf16.mxu1 %v3447_v8 }
 0xdc9   :  { %3143 = vmatprep.subr.bf16.mxu0 %v3236_v29 }
 0xdcc   :  { %3144 = vmatpush3.bf16.msra.mxu0 %v3236_v29  ;;  %v3423_v29 = vld [vmem:[%s4535_s7 + $0x10] sm:$0xff] }
 0xdcd   :  { %3145 = vmatprep.subr.bf16.mxu0 %v3237_v13 }
 0xdd0   :  { %3146 = vmatpush3.bf16.msra.mxu0 %v3237_v13  ;;  %v2222_v13 = vrot.slane %v3423_v29, %v1143_v5 }
 0xdd1   :  { %3159 = vmatprep.subr.bf16.mxu0 %v3447_v8 }
 0xe83   :  { %v3137_v16 = vpop.f32.mrf.mxu0 }
 0xe84   :  { %v2166_v1 = vadd.f32 %v3137_v16, %v2747_v50 }
 0xe85   :  { %v2157_v10 = vpop.f32.mrf.mxu0 }
 0xe86   :  { %v2174_v45 = vmul.f32 %v2166_v1, %v2166_v1  ;;  %v2158_v63 = vadd.f32 %v2747_v50, %v2157_v10 }
 0xe87   :  { %v3138_v9 = vpop.f32.mrf.mxu0 }
 0xe88   :  { %v2178_v7 = vmul.f32 %v2174_v45, %v2166_v1  ;;  %v2172_v31 = vmul.f32 %v2158_v63, %v2158_v63  ;;  %v2169_v25 = vadd.f32 %v3138_v9, %v2747_v50 }
 0xe89   :  { %v2160_v6 = vpop.f32.mrf.mxu0 }
 0xe8a   :  { %v2182_v35 = vmul.f32 0.044715, %v2178_v7  ;;  %v2176_v61 = vmul.f32 %v2172_v31, %v2158_v63  ;;  %v2175_v14 = vmul.f32 %v2169_v25, %v2169_v25  ;;  %v2161_v4 = vadd.f32 %v2747_v50, %v2160_v6 }
 0xe8c   :  { %v2186_v40 = vadd.f32 %v2182_v35, %v2166_v1  ;;  %v2180_v60 = vmul.f32 0.044715, %v2176_v61  ;;  %v2179_v44 = vmul.f32 %v2175_v14, %v2169_v25  ;;  %v2173_v42 = vmul.f32 %v2161_v4, %v2161_v4 }
 0xe8e   :  { %v2190_v55 = vmul.f32 0.7978846, %v2186_v40  ;;  %v2184_v33 = vadd.f32 %v2180_v60, %v2158_v63  ;;  %v2183_v17 = vmul.f32 0.044715, %v2179_v44  ;;  %v2177_v57 = vmul.f32 %v2173_v42, %v2161_v4 }
 0xe90   :  { %v2188_v37 = vmul.f32 0.7978846, %v2184_v33  ;;  %v2187_v58 = vadd.f32 %v2183_v17, %v2169_v25  ;;  %v2181_v36 = vmul.f32 0.044715, %v2177_v57  ;;  %3392 = vtanh.f32 %v2190_v55 }
 0xe92   :  { %3394 = vtanh.f32 %v2188_v37  ;;  %v2191_v59 = vmul.f32 0.7978846, %v2187_v58  ;;  %v2185_v20 = vadd.f32 %v2181_v36, %v2161_v4 }
 0xe94   :  { %3396 = vtanh.f32 %v2191_v59  ;;  %v2189_v46 = vmul.f32 0.7978846, %v2185_v20 }
 0xe96   :  { %3398 = vtanh.f32 %v2189_v46 }
 0xe9d   :  { %v3393_v52 = vpop.eup %3392 }
 0xe9e   :  { %v2198_v15 = vadd.f32 1.0, %v3393_v52 }
 0xe9f   :  { %v3395_v24 = vpop.eup %3394 }
 0xea0   :  { %v2196_v23 = vadd.f32 1.0, %v3395_v24  ;;  %v2202_v34 = vmul.f32 0.5, %v2198_v15 }
 0xea1   :  { %v3397_v2 = vpop.eup %3396 }
 0xea2   :  { %v2199_v62 = vadd.f32 1.0, %v3397_v2  ;;  %v2200_v39 = vmul.f32 0.5, %v2196_v23  ;;  %v2206_v41 = vmul.f32 %v2202_v34, %v2166_v1 }
 0xea3   :  { %v3399_v22 = vpop.eup %3398 }
 0xea4   :  { %v2203_v26 = vmul.f32 0.5, %v2199_v62  ;;  %v2197_v56 = vadd.f32 1.0, %v3399_v22  ;;  %v2204_v3 = vmul.f32 %v2200_v39, %v2158_v63 }
 0xea6   :  { %v2201_v49 = vmul.f32 0.5, %v2197_v56  ;;  %v2207_v48 = vmul.f32 %v2203_v26, %v2169_v25 }
 0xea8   :  { %v2205_v0 = vmul.f32 %v2201_v49, %v2161_v4  ;;  %v2209_v32 = vpack.c.bf16 %v2207_v48, %v2206_v41 }
 0xeaa   :  { %v2208_v53 = vpack.c.bf16 %v2205_v0, %v2204_v3  ;;  %v2353_v0 = vrot.slane %v3423_v29, %v1275_v43  ;;  %v3243_v43 = vld [vmem:[%s4541_s13 + $0x38] sm:$0xff]  }
 0xeac   :  { %3147 = vmatprep.mubr.msk.bf16.mxu0 %vm1169_vm4, %v2208_v53 }
 0xead   :  { %3148 = vmatmul.mubr.msk.bf16.vlgmr.msra.gmra.mxu0 %vm1169_vm4, %v2209_v32 }
 0xeae   :  { %3163 = vmatprep.mubr.msk.bf16.mxu0 %vm3448_vm1, %v3447_v8  ;;  %3160 = vmatpush3.bf16.msra.mxu0 %v3240_v47 }
 0xeaf   :  { %3161 = vmatprep.subr.bf16.mxu0 %v3447_v8 }
 0xeb2   :  { %3162 = vmatpush3.bf16.msra.mxu0 %v3241_v28  ;;  %v2766_v28 = vld [vmem:[%s4535_s7 + $0x18] ss:$0 sm:$0xff] }
 0xeb3   :  { %3175 = vmatprep.subr.bf16.mxu0 %v3447_v8 }
 0xf6d   :  { %v3149_v50 = vpop.f32.mrf.mxu0 }
 0xf6e   :  { %v2296_v10 = vadd.f32 %v3149_v50, %v2222_v13 }
 0xf6f   :  { %v2287_v16 = vpop.f32.mrf.mxu0 }
 0xf70   :  { %v2288_v1 = vadd.f32 %v2287_v16, %v2222_v13  ;;  %v2304_v31 = vadd.f32 %v2296_v10, %v4429_v12 }
 0xf71   :  { %v3150_v45 = vpop.f32.mrf.mxu0 }
 0xf72   :  { %v2302_v63 = vadd.f32 %v2288_v1, %v4425_v18  ;;  %v2299_v9 = vadd.f32 %v3150_v45, %v2222_v13  ;;  %v2322_v14 = vmul.f32 %v2304_v31, %v2304_v31  ;;  %v2309_v44 = vsel %vm53_vm0, %v2304_v31, 0.0 }
 0xf73   :  { %v2290_v7 = vpop.f32.mrf.mxu0 }
 0xf74   :  { %v2291_v25 = vadd.f32 %v2290_v7, %v2222_v13  ;;  %v2320_v6 = vmul.f32 %v2302_v63, %v2302_v63  ;;  %v2305_v35 = vadd.f32 %v2299_v9, %v4431_v19  ;;  %v2306_v5 = vsel %vm53_vm0, %v2302_v63, 0.0 }
 0xf75   :  { %v2327_v19 = vsel %vm53_vm0, %v2322_v14, 0.0 }
 0xf76   :  { %v2303_v61 = vadd.f32 %v2291_v25, %v4427_v38  ;;  %v2324_v18 = vsel %vm53_vm0, %v2320_v6, 0.0  ;;  %v2323_v42 = vmul.f32 %v2305_v35, %v2305_v35  ;;  %v2311_v38 = vsel %vm53_vm0, %v2305_v35, 0.0  ;;  %v3245_v25 = vld [vmem:[%s4541_s13 + $0x30] sm:$0xff]  }
 0xf78   :  { %v2307_v4 = vsel %vm53_vm0, %v2303_v61, 0.0  ;;  %v2321_v40 = vmul.f32 %v2303_v61, %v2303_v61  ;;  %v2329_v37 = vsel %vm53_vm0, %v2323_v42, 0.0 }
 0xf79   :  { %v2308_v60 = vadd.f32 %v2307_v4, %v2306_v5 }
 0xf7a   :  { %v2325_v12 = vsel %vm53_vm0, %v2321_v40, 0.0 }
 0xf7b   :  { %v2310_v55 = vadd.f32 %v2309_v44, %v2308_v60  ;;  %v2326_v33 = vadd.f32 %v2325_v12, %v2324_v18 }
 0xf7d   :  { %v2312_v17 = vadd.f32 %v2311_v38, %v2310_v55  ;;  %v2328_v57 = vadd.f32 %v2327_v19, %v2326_v33  ;;  %v2779_v38 = vld [vmem:[%s4542_s14] ss:$0 sm:$0xff]  ;;  %s3424_s14 = scalar_lea.vmem %s2635_s11, 128 }
 0xf7e   :  { %p3425_p0 = scmp.ne.s32.totalorder %s2635_s11, %s3424_s14  ;;  %p3430_p2 = scmp.lt.s32.totalorder %s3424_s14, %s3424_s14 }
 0xf7f   :  { %v2313_v58 = vrot.slane %v2312_v17, 4  ;;  %v2330_v36 = vadd.f32 %v2329_v37, %v2328_v57 }
 0xf80   :  { %p3431_p3 = por %p3430_p2, %p3429_p1 }
 0xf81   :  { %v2314_v59 = vadd.f32 %v2313_v58, %v2312_v17  ;;  %v2331_v20 = vrot.slane %v2330_v36, 4 }
 0xf82   :  { %p3432_p4 = pnand %p3431_p3, %p3425_p0 }
 0xf83   :  { %v2315_v46 = vrot.slane %v2314_v59, 2  ;;  %v2332_v52 = vadd.f32 %v2331_v20, %v2330_v36 }
 0xf85   :  { %v2316_v24 = vadd.f32 %v2315_v46, %v2314_v59  ;;  %v2333_v23 = vrot.slane %v2332_v52, 2 }
 0xf87   :  { %v2317_v2 = vrot.slane %v2316_v24, 1  ;;  %v2334_v15 = vadd.f32 %v2333_v23, %v2332_v52 }
 0xf89   :  { %v2318_v62 = vadd.f32 %v2317_v2, %v2316_v24  ;;  %v2335_v22 = vrot.slane %v2334_v15, 1  ;;  %v2621_v24 = vpop.permute.xlu1 %2620 }
 0xf8b   :  { %v2319_v39 = vmul.f32 0.03125, %v2318_v62  ;;  %v2336_v26 = vadd.f32 %v2335_v22, %v2334_v15 }
 0xf8d   :  { %v2337_v56 = vmul.f32 0.03125, %v2336_v26  ;;  %v2338_v34 = vmul.f32 %v2319_v39, %v2319_v39  ;;  %v2341_v3 = vsub.f32 %v2303_v61, %v2319_v39  ;;  %v2340_v41 = vsub.f32 %v2302_v63, %v2319_v39 }
 0xf8e   :  { %v2342_v47 = vsub.f32 %v2304_v31, %v2319_v39  ;;  %v2343_v51 = vsub.f32 %v2305_v35, %v2319_v39  ;;  %v3244_v31 = vld [vmem:[%s4541_s13 + $0x20] sm:$0xff]  }
 0xf8f   :  { %v2339_v49 = vsub.f32 %v2337_v56, %v2338_v34 }
 0xf91   :  { %v2344_v48 = vadd.f32 1e-05, %v2339_v49 }
 0xf93   :  { %3400 = vrsqrt.f32 %v2344_v48 }
 0xfa0   :  { %v3401_v53 = vpop.eup %3400 }
 0xfa1   :  { %v2347_v32 = vmul.f32 %v3401_v53, %v2341_v3  ;;  %v2346_v30 = vmul.f32 %v3401_v53, %v2340_v41  ;;  %v2348_v16 = vmul.f32 %v3401_v53, %v2342_v47  ;;  %v2349_v1 = vmul.f32 %v3401_v53, %v2343_v51 }
 0xfa3   :  { %v2355_v13 = vmul.f32 %v2353_v0, %v2347_v32  ;;  %v2354_v50 = vmul.f32 %v2353_v0, %v2346_v30  ;;  %v2356_v9 = vmul.f32 %v2353_v0, %v2348_v16  ;;  %v2357_v7 = vmul.f32 %v2353_v0, %v2349_v1 }
 0xfa5   :  { %v2363_v10 = vadd.f32 %v2766_v28, %v2355_v13  ;;  %v2362_v45 = vadd.f32 %v2766_v28, %v2354_v50  ;;  %v2364_v6 = vadd.f32 %v2766_v28, %v2356_v9  ;;  %v2365_v35 = vadd.f32 %v2766_v28, %v2357_v7 }
 0xfa7   :  { %v2371_v29 = vpack.c.bf16 %v2363_v10, %v2363_v10  ;;  %v2366_v63 = vpack.c.bf16 %v2362_v45, %v2362_v45  ;;  %v2486_v61 = vpack.c.bf16 %v2364_v6, %v2364_v6  ;;  %v2547_v14 = vpack.c.bf16 %v2365_v35, %v2365_v35 }
 0xfa9   :  { %3156 = vmatmul.mubr.msk.bf16.vlgmr.msra.gmra.mxu1 %vm53_vm0, %v2371_v29  ;;  %3164 = vmatmul.mubr.msk.bf16.vlgmr.msra.gmra.mxu0 %vm53_vm0, %v2366_v63 }
 0xfaa   :  { %3168 = vmatpush3.bf16.msra.mxu1 %v3242_v54  ;;  %3176 = vmatpush3.bf16.msra.mxu0 %v3243_v43 }
 0xfab   :  { %3169 = vmatprep.subr.bf16.mxu1 %v3447_v8  ;;  %3177 = vmatprep.subr.bf16.mxu0 %v3447_v8 }
 0xfac   :  { %3171 = vmatprep.mubr.msk.bf16.mxu1 %vm3448_vm1, %v3447_v8  ;;  %3179 = vmatprep.mubr.msk.bf16.mxu0 %vm3448_vm1, %v3447_v8 }
 0xfae   :  { %3170 = vmatpush3.bf16.msra.mxu1 %v3244_v31  ;;  %3178 = vmatpush3.bf16.msra.mxu0 %v3245_v25 }
 0xfb1   :  { %3172 = vmatmul.mubr.msk.bf16.vlgmr.msra.gmra.mxu1 %vm53_vm0, %v2486_v61  ;;  %3180 = vmatmul.mubr.msk.bf16.vlgmr.msra.gmra.mxu0 %vm53_vm0, %v2547_v14 }
0x1069   :  { %v2425_v5 = vpop.f32.mrf.mxu1  ;;  %v2480_v4 = vpop.f32.mrf.mxu0 }
0x106a   :  { %v2481_v55 = vadd.f32 %v2480_v4, %v2425_v5 }
0x106b   :  { %v3157_v40 = vpop.f32.mrf.mxu1  ;;  %v3165_v60 = vpop.f32.mrf.mxu0 }
0x106d   :  { %v2428_v44 = vpop.f32.mrf.mxu1  ;;  %v2483_v18 = vpop.f32.mrf.mxu0 }
0x106f   :  { %v3158_v42 = vpop.f32.mrf.mxu1  ;;  %v3166_v12 = vpop.f32.mrf.mxu0 }
0x1071   :  { %v2540_v33 = vpop.f32.mrf.mxu1  ;;  %v2601_v19 = vpop.f32.mrf.mxu0 }
0x1072   :  { %v2546_v8 = vadd.f32 %v2540_v33, %v2481_v55 }
0x1073   :  { %v3173_v17 = vpop.f32.mrf.mxu1  ;;  %v3181_v57 = vpop.f32.mrf.mxu0 }
0x1074   :  { %v2607_v37 = vadd.f32 %v2601_v19, %v2546_v8 }
0x1075   :  { %v2543_v58 = vpop.f32.mrf.mxu1  ;;  %v2604_v36 = vpop.f32.mrf.mxu0 }
0x1076   :  { %v2615_v59 = vadd.f32 %v2779_v38, %v2607_v37 }
0x1077   :  { %v3174_v20 = vpop.f32.mrf.mxu1  ;;  %v3182_v46 = vpop.f32.mrf.mxu0 }
0x1078   :  { %v2616_v52 = vsub.f32 %v2615_v59, %v3562_v27 }
0x107a   :  { %v2623_v23 = vmul.f32 %v2621_v24, %v2616_v52 }
0x107c   :  { %v2624_v2 = vmul.f32 %v2623_v23, %v3558_v21 }
0x107e   :  { %v2625_v15 = vadd.f32 %v2624_v2, %v3554_v11 }
0x1080   :  { %2627 = vst.msk [vmem:[#allocation2] sm:$0xff] %vm2626_vm5, %v2625_v15 }
0x1081   :  { %3435 = shalt.err (!%p3432_p4)
}
0x1082   :  { %2637 = dma.vmem_to_hbm [thread:$0]  %s2635_s11, 128, %s4543_s15, [#allocation3]  }
0x1083   :  { %3444 = dma.done.wait [#allocation3], 128  }
0x1084   :  { %3445 = vsyncadd [#allocation3], 4294967168 }
0x1085   :  { %2641 = vsyncpa [#allocation3], 1 }

</bundles_post_ra>
